<compile_context>
chip_gen: v6e
topology: v6e:2x2x1
jax: 0.10.0
libtpu: 0.0.40
codegen_flags: <defaults>
</compile_context>

<pallas_src>
import jax
import jax.numpy as jnp
import numpy as np
from jax.experimental import pallas as pl
from jax.experimental.pallas import tpu as pltpu


# ----------------------------- Pallas kernel ---------------------------------
def bottleneck_kernel(x_ref, w1_ref, w2_ref, w3_ref,
                      s1_ref, b1_ref, s2_ref, b2_ref, s3_ref, b3_ref,
                      o_ref, col_ref, acc_ref):
    Nb, H, W, Cin = x_ref.shape
    P = w1_ref.shape[1]
    M = Nb * H * W

    # --- conv1 (1x1, no bias) + bn1 + relu ----------------------------------
    # bf16 matmul operands, f32 accumulation / elementwise.
    x_bf = x_ref[...].reshape(M, Cin).astype(jnp.bfloat16)
    y1 = jnp.dot(x_bf, w1_ref[...], preferred_element_type=jnp.float32)
    y1 = jnp.maximum(y1 * s1_ref[...] + b1_ref[...], 0.0)          # (M, P) f32
    y1v = y1.reshape(Nb, H, W, P)

    # --- build kw-im2col buffer for the 3x3 conv ----------------------------
    # col[n, hp, w, kw*P + c] == zero-padded y1 at (hp - 1, w + kw - 1, c).
    # Only the halo cells (never written with data) are zeroed each step.
    zrow = jnp.zeros((Nb, 1, W, 3 * P), jnp.float32)
    zcol = jnp.zeros((Nb, H, 1, P), jnp.float32)
    col_ref[:, 0:1, :, :] = zrow                    # top halo row
    col_ref[:, H + 1:H + 2, :, :] = zrow            # bottom halo row
    # kw = 0 block: y1 shifted right by one column
    col_ref[:, 1:H + 1, 0:1, 0:P] = zcol
    col_ref[:, 1:H + 1, 1:W, 0:P] = y1v[:, :, 0:W - 1, :]
    # kw = 1 block: y1 centered
    col_ref[:, 1:H + 1, :, P:2 * P] = y1v
    # kw = 2 block: y1 shifted left by one column
    col_ref[:, 1:H + 1, 0:W - 1, 2 * P:3 * P] = y1v[:, :, 1:W, :]
    col_ref[:, 1:H + 1, W - 1:W, 2 * P:3 * P] = zcol

    # --- conv2 (3x3, stride=1, pad=1) + bn2 + relu --------------------------
    # 3 deep-K matmuls (K = 3P), accumulated in an f32 VMEM scratch.
    for kh in range(3):
        patch = col_ref[:, kh:kh + H, :, :].reshape(M, 3 * P).astype(jnp.bfloat16)
        t = jnp.dot(patch, w2_ref[kh], preferred_element_type=jnp.float32)
        if kh == 0:
            acc_ref[...] = t
        else:
            acc_ref[...] += t
    y2 = jnp.maximum(acc_ref[...] * s2_ref[...] + b2_ref[...], 0.0)  # (M, P)

    # --- conv3 (1x1) + bn3 + residual add + relu ----------------------------
    y3 = jnp.dot(y2.astype(jnp.bfloat16), w3_ref[...],
                 preferred_element_type=jnp.float32)
    y3 = y3 * s3_ref[...] + b3_ref[...]
    res = x_ref[...].reshape(M, Cin)                 # re-read x for residual
    out = jnp.maximum(y3 + res, 0.0)                 # (M, Cin)
    o_ref[...] = out.reshape(Nb, H, W, Cin).astype(o_ref.dtype)


# ------------------------------ JAX wrapper -----------------------------------
def _fold_bn(gamma, beta, mean, var, eps=1e-5):
    scale = gamma / jnp.sqrt(var + eps)
    bias = beta - mean * scale
    return scale[None, :].astype(jnp.float32), bias[None, :].astype(jnp.float32)


def _pick_batch_block(n, h, w, max_rows=4096):
    """Largest divisor of n that keeps the block moderate and >=2 grid steps."""
    cap = max(1, max_rows // (h * w))
    best = 1
    for d in range(1, n + 1):
        if n % d:
            continue
        if d <= cap and (n // d >= 2 or n == 1):
            best = d
    return best


def bottleneck_forward(x_nchw, p):
    """Bottleneck forward (stride=1, downsample=None). Input/output are NCHW."""
    x = jnp.transpose(x_nchw, (0, 2, 3, 1)).astype(jnp.float32)   # NHWC
    N, H, W, Cin = x.shape
    planes = p["conv1_w"].shape[0]
    assert Cin == planes * 4, "identity residual requires inplanes == planes*4"

    nb = _pick_batch_block(N, H, W)
    assert N % nb == 0

    # PyTorch conv weights (O, I, kh, kw) -> kernel layouts (bf16 operands).
    w1 = jnp.transpose(p["conv1_w"][:, :, 0, 0], (1, 0)).astype(jnp.bfloat16)  # (Cin, P)
    w2 = jnp.transpose(p["conv2_w"], (2, 3, 1, 0)).reshape(
        3, 3 * planes, planes).astype(jnp.bfloat16)                            # (3, 3P, P)
    w3 = jnp.transpose(p["conv3_w"][:, :, 0, 0], (1, 0)).astype(jnp.bfloat16)  # (P, 4P)

    s1, b1 = _fold_bn(p["bn1_g"], p["bn1_b"], p["bn1_m"], p["bn1_v"])
    s2, b2 = _fold_bn(p["bn2_g"], p["bn2_b"], p["bn2_m"], p["bn2_v"])
    s3, b3 = _fold_bn(p["bn3_g"], p["bn3_b"], p["bn3_m"], p["bn3_v"])

    out_nhwc = pl.pallas_call(
        bottleneck_kernel,
        out_shape=jax.ShapeDtypeStruct((N, H, W, Cin), jnp.float32),
        grid=(N // nb,),
        in_specs=[
            pl.BlockSpec((nb, H, W, Cin), lambda b: (b, 0, 0, 0)),        # x
            pl.BlockSpec((Cin, planes), lambda b: (0, 0)),                # w1
            pl.BlockSpec((3, 3 * planes, planes), lambda b: (0, 0, 0)),   # w2 (im2col layout)
            pl.BlockSpec((planes, Cin), lambda b: (0, 0)),                # w3
            pl.BlockSpec((1, planes), lambda b: (0, 0)),                  # s1
            pl.BlockSpec((1, planes), lambda b: (0, 0)),                  # b1
            pl.BlockSpec((1, planes), lambda b: (0, 0)),                  # s2
            pl.BlockSpec((1, planes), lambda b: (0, 0)),                  # b2
            pl.BlockSpec((1, Cin), lambda b: (0, 0)),                     # s3
            pl.BlockSpec((1, Cin), lambda b: (0, 0)),                     # b3
        ],
        out_specs=pl.BlockSpec((nb, H, W, Cin), lambda b: (b, 0, 0, 0)),
        scratch_shapes=[
            pltpu.VMEM((nb, H + 2, W, 3 * planes), jnp.float32),  # im2col buffer
            pltpu.VMEM((nb * H * W, planes), jnp.float32),        # conv2 accumulator
        ],
        compiler_params=pltpu.CompilerParams(
            dimension_semantics=("parallel",),
            vmem_limit_bytes=32 * 1024 * 1024,
        ),
    )(x, w1, w2, w3, s1, b1, s2, b2, s3, b3)

    return jnp.transpose(out_nhwc, (0, 3, 1, 2))                  # back to NCHW


# ----------------------- pure-JAX reference (for checking) --------------------
def bottleneck_reference(x, p, eps=1e-5):
    def conv(x, w, pad=0):
        return jax.lax.conv_general_dilated(
            x, w, (1, 1), [(pad, pad), (pad, pad)],
            dimension_numbers=("NCHW", "OIHW", "NCHW"))

    def bn(x, g, b, m, v):
        g, b, m, v = (t[None, :, None, None] for t in (g, b, m, v))
        return (x - m) / jnp.sqrt(v + eps) * g + b

    out = jax.nn.relu(bn(conv(x, p["conv1_w"]),
                         p["bn1_g"], p["bn1_b"], p["bn1_m"], p["bn1_v"]))
    out = jax.nn.relu(bn(conv(out, p["conv2_w"], pad=1),
                         p["bn2_g"], p["bn2_b"], p["bn2_m"], p["bn2_v"]))
    out = bn(conv(out, p["conv3_w"]),
             p["bn3_g"], p["bn3_b"], p["bn3_m"], p["bn3_v"])
    return jax.nn.relu(out + x)


# --------------------------------- main ---------------------------------------
if __name__ == "__main__":
    # Small but TPU-friendly shapes: Cin = 4*planes = 128 keeps the residual /
    # output channels lane-dense; N=8 with nb=4 gives 2 parallel grid steps.
    N, planes, H, W = 8, 32, 8, 8
    inplanes = planes * 4

    key = jax.random.PRNGKey(0)
    ks = jax.random.split(key, 8)

    def bn_params(k, c):
        k1, k2, k3, k4 = jax.random.split(k, 4)
        return dict(
            g=1.0 + 0.1 * jax.random.normal(k1, (c,), jnp.float32),
            b=0.1 * jax.random.normal(k2, (c,), jnp.float32),
            m=0.1 * jax.random.normal(k3, (c,), jnp.float32),
            v=1.0 + 0.1 * jnp.abs(jax.random.normal(k4, (c,), jnp.float32)),
        )

    bn1 = bn_params(ks[3], planes)
    bn2 = bn_params(ks[4], planes)
    bn3 = bn_params(ks[5], inplanes)

    params = {
        "conv1_w": 0.1 * jax.random.normal(ks[0], (planes, inplanes, 1, 1), jnp.float32),
        "conv2_w": 0.1 * jax.random.normal(ks[1], (planes, planes, 3, 3), jnp.float32),
        "conv3_w": 0.1 * jax.random.normal(ks[2], (inplanes, planes, 1, 1), jnp.float32),
        "bn1_g": bn1["g"], "bn1_b": bn1["b"], "bn1_m": bn1["m"], "bn1_v": bn1["v"],
        "bn2_g": bn2["g"], "bn2_b": bn2["b"], "bn2_m": bn2["m"], "bn2_v": bn2["v"],
        "bn3_g": bn3["g"], "bn3_b": bn3["b"], "bn3_m": bn3["m"], "bn3_v": bn3["v"],
    }

    x = jax.random.normal(ks[6], (N, inplanes, H, W), jnp.float32)   # NCHW input

    out = bottleneck_forward(x, params)
    out = jax.block_until_ready(out)

    ref = bottleneck_reference(x, params)
    # bf16 matmul operands (f32 accumulation) vs. a pure-f32 reference.
    np.testing.assert_allclose(np.asarray(out), np.asarray(ref), atol=5e-2, rtol=5e-2)

    print("KERNEL_OK")
</pallas_src>

<mosaic_0001>
module attributes {stable_mosaic.version = 11 : i64} {
  func.func @bottleneck_kernel(%arg0: i32, %arg1: memref<4x8x8x128xf32, #tpu.memory_space<vmem>>, %arg2: memref<128x32xbf16, #tpu.memory_space<vmem>>, %arg3: memref<3x96x32xbf16, #tpu.memory_space<vmem>>, %arg4: memref<32x128xbf16, #tpu.memory_space<vmem>>, %arg5: memref<1x32xf32, #tpu.memory_space<vmem>>, %arg6: memref<1x32xf32, #tpu.memory_space<vmem>>, %arg7: memref<1x32xf32, #tpu.memory_space<vmem>>, %arg8: memref<1x32xf32, #tpu.memory_space<vmem>>, %arg9: memref<1x128xf32, #tpu.memory_space<vmem>>, %arg10: memref<1x128xf32, #tpu.memory_space<vmem>>, %arg11: memref<4x8x8x128xf32, #tpu.memory_space<vmem>>, %arg12: memref<4x10x8x96xf32, #tpu.memory_space<vmem>>, %arg13: memref<256x32xf32, #tpu.memory_space<vmem>>) attributes {dimension_semantics = [#tpu.dimension_semantics<parallel>], iteration_bounds = array<i64: 2>, scalar_prefetch = 0 : i64, scratch_operands = 2 : i64, tpu.core_type = #tpu.core_type<tc>, window_params = [{transform_indices = @transform_0, window_bounds = array<i64: 4, 8, 8, 128>}, {pipeline_mode = #tpu.pipeline_mode<synchronous>, transform_indices = @transform_1, window_bounds = array<i64: 128, 32>}, {pipeline_mode = #tpu.pipeline_mode<synchronous>, transform_indices = @transform_2, window_bounds = array<i64: 3, 96, 32>}, {pipeline_mode = #tpu.pipeline_mode<synchronous>, transform_indices = @transform_3, window_bounds = array<i64: 32, 128>}, {pipeline_mode = #tpu.pipeline_mode<synchronous>, transform_indices = @transform_4, window_bounds = array<i64: 1, 32>}, {pipeline_mode = #tpu.pipeline_mode<synchronous>, transform_indices = @transform_5, window_bounds = array<i64: 1, 32>}, {pipeline_mode = #tpu.pipeline_mode<synchronous>, transform_indices = @transform_6, window_bounds = array<i64: 1, 32>}, {pipeline_mode = #tpu.pipeline_mode<synchronous>, transform_indices = @transform_7, window_bounds = array<i64: 1, 32>}, {pipeline_mode = #tpu.pipeline_mode<synchronous>, transform_indices = @transform_8, window_bounds = array<i64: 1, 128>}, {pipeline_mode = #tpu.pipeline_mode<synchronous>, transform_indices = @transform_9, window_bounds = array<i64: 1, 128>}, {transform_indices = @transform_10, window_bounds = array<i64: 4, 8, 8, 128>}]} {
    %c0 = arith.constant 0 : index
    %c0_0 = arith.constant 0 : index
    %c0_1 = arith.constant 0 : index
    %c0_2 = arith.constant 0 : index
    %0 = vector.load %arg1[%c0, %c0_0, %c0_1, %c0_2] : memref<4x8x8x128xf32, #tpu.memory_space<vmem>>, vector<4x8x8x128xf32>
    %1 = vector.shape_cast %0 : vector<4x8x8x128xf32> to vector<256x128xf32>
    %2 = arith.truncf %1 : vector<256x128xf32> to vector<256x128xbf16>
    %c0_3 = arith.constant 0 : index
    %c0_4 = arith.constant 0 : index
    %3 = vector.load %arg2[%c0_3, %c0_4] : memref<128x32xbf16, #tpu.memory_space<vmem>>, vector<128x32xbf16>
    %cst = arith.constant dense<0.000000e+00> : vector<256x32xf32>
    %4 = tpu.matmul %2, %3, %cst {dimension_numbers = #tpu.dot_dimension_numbers<[1], [0], [0], [1], [0, 0, 1, 1], [], []>} : vector<256x128xbf16>, vector<128x32xbf16>, vector<256x32xf32> -> vector<256x32xf32>
    %c0_5 = arith.constant 0 : index
    %c0_6 = arith.constant 0 : index
    %5 = vector.load %arg5[%c0_5, %c0_6] : memref<1x32xf32, #tpu.memory_space<vmem>>, vector<1x32xf32>
    %6 = vector.broadcast %5 : vector<1x32xf32> to vector<256x32xf32>
    %7 = arith.mulf %4, %6 : vector<256x32xf32>
    %c0_7 = arith.constant 0 : index
    %c0_8 = arith.constant 0 : index
    %8 = vector.load %arg6[%c0_7, %c0_8] : memref<1x32xf32, #tpu.memory_space<vmem>>, vector<1x32xf32>
    %9 = vector.broadcast %8 : vector<1x32xf32> to vector<256x32xf32>
    %10 = arith.addf %7, %9 : vector<256x32xf32>
    %cst_9 = arith.constant 0.000000e+00 : f32
    %11 = vector.broadcast %cst_9 : f32 to vector<256x32xf32>
    %12 = arith.maximumf %10, %11 : vector<256x32xf32>
    %13 = vector.shape_cast %12 : vector<256x32xf32> to vector<4x8x8x32xf32>
    %cst_10 = arith.constant 0.000000e+00 : f32
    %14 = vector.broadcast %cst_10 : f32 to vector<4x1x8x96xf32>
    %cst_11 = arith.constant 0.000000e+00 : f32
    %15 = vector.broadcast %cst_11 : f32 to vector<4x8x1x32xf32>
    %c0_12 = arith.constant 0 : index
    %c0_13 = arith.constant 0 : index
    %c0_14 = arith.constant 0 : index
    %c0_15 = arith.constant 0 : index
    %16 = vector.load %arg12[%c0_12, %c0_13, %c0_14, %c0_15] : memref<4x10x8x96xf32, #tpu.memory_space<vmem>>, vector<4x1x8x96xf32>
    tpu.vector_store %arg12[%c0_12, %c0_13, %c0_14, %c0_15], %14 {strides = array<i32>} : memref<4x10x8x96xf32, #tpu.memory_space<vmem>>, vector<4x1x8x96xf32>,
    %c0_16 = arith.constant 0 : index
    %c9 = arith.constant 9 : index
    %c0_17 = arith.constant 0 : index
    %c0_18 = arith.constant 0 : index
    %17 = vector.load %arg12[%c0_16, %c9, %c0_17, %c0_18] : memref<4x10x8x96xf32, #tpu.memory_space<vmem>>, vector<4x1x8x96xf32>
    tpu.vector_store %arg12[%c0_16, %c9, %c0_17, %c0_18], %14 {strides = array<i32>} : memref<4x10x8x96xf32, #tpu.memory_space<vmem>>, vector<4x1x8x96xf32>,
    %c0_19 = arith.constant 0 : index
    %c1 = arith.constant 1 : index
    %c0_20 = arith.constant 0 : index
    %c0_21 = arith.constant 0 : index
    %18 = vector.load %arg12[%c0_19, %c1, %c0_20, %c0_21] : memref<4x10x8x96xf32, #tpu.memory_space<vmem>>, vector<4x8x1x32xf32>
    tpu.vector_store %arg12[%c0_19, %c1, %c0_20, %c0_21], %15 {strides = array<i32>} : memref<4x10x8x96xf32, #tpu.memory_space<vmem>>, vector<4x8x1x32xf32>,
    %19 = vector.extract_strided_slice %13 {offsets = [0, 0, 0, 0], sizes = [4, 8, 7, 32], strides = [1, 1, 1, 1]} : vector<4x8x8x32xf32> to vector<4x8x7x32xf32>
    %c0_22 = arith.constant 0 : index
    %c1_23 = arith.constant 1 : index
    %c1_24 = arith.constant 1 : index
    %c0_25 = arith.constant 0 : index
    %20 = vector.load %arg12[%c0_22, %c1_23, %c1_24, %c0_25] : memref<4x10x8x96xf32, #tpu.memory_space<vmem>>, vector<4x8x7x32xf32>
    tpu.vector_store %arg12[%c0_22, %c1_23, %c1_24, %c0_25], %19 {strides = array<i32>} : memref<4x10x8x96xf32, #tpu.memory_space<vmem>>, vector<4x8x7x32xf32>,
    %c0_26 = arith.constant 0 : index
    %c1_27 = arith.constant 1 : index
    %c0_28 = arith.constant 0 : index
    %c32 = arith.constant 32 : index
    %21 = vector.load %arg12[%c0_26, %c1_27, %c0_28, %c32] : memref<4x10x8x96xf32, #tpu.memory_space<vmem>>, vector<4x8x8x32xf32>
    tpu.vector_store %arg12[%c0_26, %c1_27, %c0_28, %c32], %13 {strides = array<i32>} : memref<4x10x8x96xf32, #tpu.memory_space<vmem>>, vector<4x8x8x32xf32>,
    %22 = vector.extract_strided_slice %13 {offsets = [0, 0, 1, 0], sizes = [4, 8, 7, 32], strides = [1, 1, 1, 1]} : vector<4x8x8x32xf32> to vector<4x8x7x32xf32>
    %c0_29 = arith.constant 0 : index
    %c1_30 = arith.constant 1 : index
    %c0_31 = arith.constant 0 : index
    %c64 = arith.constant 64 : index
    %23 = vector.load %arg12[%c0_29, %c1_30, %c0_31, %c64] : memref<4x10x8x96xf32, #tpu.memory_space<vmem>>, vector<4x8x7x32xf32>
    tpu.vector_store %arg12[%c0_29, %c1_30, %c0_31, %c64], %22 {strides = array<i32>} : memref<4x10x8x96xf32, #tpu.memory_space<vmem>>, vector<4x8x7x32xf32>,
    %c0_32 = arith.constant 0 : index
    %c1_33 = arith.constant 1 : index
    %c7 = arith.constant 7 : index
    %c64_34 = arith.constant 64 : index
    %24 = vector.load %arg12[%c0_32, %c1_33, %c7, %c64_34] : memref<4x10x8x96xf32, #tpu.memory_space<vmem>>, vector<4x8x1x32xf32>
    tpu.vector_store %arg12[%c0_32, %c1_33, %c7, %c64_34], %15 {strides = array<i32>} : memref<4x10x8x96xf32, #tpu.memory_space<vmem>>, vector<4x8x1x32xf32>,
    %c0_35 = arith.constant 0 : index
    %c0_36 = arith.constant 0 : index
    %c0_37 = arith.constant 0 : index
    %c0_38 = arith.constant 0 : index
    %25 = vector.load %arg12[%c0_35, %c0_36, %c0_37, %c0_38] : memref<4x10x8x96xf32, #tpu.memory_space<vmem>>, vector<4x8x8x96xf32>
    %26 = vector.shape_cast %25 : vector<4x8x8x96xf32> to vector<256x96xf32>
    %27 = arith.truncf %26 : vector<256x96xf32> to vector<256x96xbf16>
    %c0_39 = arith.constant 0 : index
    %c0_40 = arith.constant 0 : index
    %c0_41 = arith.constant 0 : index
    %28 = vector.load %arg3[%c0_39, %c0_40, %c0_41] : memref<3x96x32xbf16, #tpu.memory_space<vmem>>, vector<1x96x32xbf16>
    %29 = vector.shape_cast %28 : vector<1x96x32xbf16> to vector<96x32xbf16>
    %cst_42 = arith.constant dense<0.000000e+00> : vector<256x32xf32>
    %30 = tpu.matmul %27, %29, %cst_42 {dimension_numbers = #tpu.dot_dimension_numbers<[1], [0], [0], [1], [0, 0, 1, 1], [], []>} : vector<256x96xbf16>, vector<96x32xbf16>, vector<256x32xf32> -> vector<256x32xf32>
    %c0_43 = arith.constant 0 : index
    %c0_44 = arith.constant 0 : index
    %31 = vector.load %arg13[%c0_43, %c0_44] : memref<256x32xf32, #tpu.memory_space<vmem>>, vector<256x32xf32>
    tpu.vector_store %arg13[%c0_43, %c0_44], %30 {strides = array<i32>} : memref<256x32xf32, #tpu.memory_space<vmem>>, vector<256x32xf32>,
    %c0_45 = arith.constant 0 : index
    %c1_46 = arith.constant 1 : index
    %c0_47 = arith.constant 0 : index
    %c0_48 = arith.constant 0 : index
    %32 = vector.load %arg12[%c0_45, %c1_46, %c0_47, %c0_48] : memref<4x10x8x96xf32, #tpu.memory_space<vmem>>, vector<4x8x8x96xf32>
    %33 = vector.shape_cast %32 : vector<4x8x8x96xf32> to vector<256x96xf32>
    %34 = arith.truncf %33 : vector<256x96xf32> to vector<256x96xbf16>
    %c1_49 = arith.constant 1 : index
    %c0_50 = arith.constant 0 : index
    %c0_51 = arith.constant 0 : index
    %35 = vector.load %arg3[%c1_49, %c0_50, %c0_51] : memref<3x96x32xbf16, #tpu.memory_space<vmem>>, vector<1x96x32xbf16>
    %36 = vector.shape_cast %35 : vector<1x96x32xbf16> to vector<96x32xbf16>
    %cst_52 = arith.constant dense<0.000000e+00> : vector<256x32xf32>
    %37 = tpu.matmul %34, %36, %cst_52 {dimension_numbers = #tpu.dot_dimension_numbers<[1], [0], [0], [1], [0, 0, 1, 1], [], []>} : vector<256x96xbf16>, vector<96x32xbf16>, vector<256x32xf32> -> vector<256x32xf32>
    %c0_53 = arith.constant 0 : index
    %c0_54 = arith.constant 0 : index
    %38 = vector.load %arg13[%c0_53, %c0_54] : memref<256x32xf32, #tpu.memory_space<vmem>>, vector<256x32xf32>
    %39 = arith.addf %38, %37 : vector<256x32xf32>
    %c0_55 = arith.constant 0 : index
    %c0_56 = arith.constant 0 : index
    %40 = vector.load %arg13[%c0_55, %c0_56] : memref<256x32xf32, #tpu.memory_space<vmem>>, vector<256x32xf32>
    tpu.vector_store %arg13[%c0_55, %c0_56], %39 {strides = array<i32>} : memref<256x32xf32, #tpu.memory_space<vmem>>, vector<256x32xf32>,
    %c0_57 = arith.constant 0 : index
    %c2 = arith.constant 2 : index
    %c0_58 = arith.constant 0 : index
    %c0_59 = arith.constant 0 : index
    %41 = vector.load %arg12[%c0_57, %c2, %c0_58, %c0_59] : memref<4x10x8x96xf32, #tpu.memory_space<vmem>>, vector<4x8x8x96xf32>
    %42 = vector.shape_cast %41 : vector<4x8x8x96xf32> to vector<256x96xf32>
    %43 = arith.truncf %42 : vector<256x96xf32> to vector<256x96xbf16>
    %c2_60 = arith.constant 2 : index
    %c0_61 = arith.constant 0 : index
    %c0_62 = arith.constant 0 : index
    %44 = vector.load %arg3[%c2_60, %c0_61, %c0_62] : memref<3x96x32xbf16, #tpu.memory_space<vmem>>, vector<1x96x32xbf16>
    %45 = vector.shape_cast %44 : vector<1x96x32xbf16> to vector<96x32xbf16>
    %cst_63 = arith.constant dense<0.000000e+00> : vector<256x32xf32>
    %46 = tpu.matmul %43, %45, %cst_63 {dimension_numbers = #tpu.dot_dimension_numbers<[1], [0], [0], [1], [0, 0, 1, 1], [], []>} : vector<256x96xbf16>, vector<96x32xbf16>, vector<256x32xf32> -> vector<256x32xf32>
    %c0_64 = arith.constant 0 : index
    %c0_65 = arith.constant 0 : index
    %47 = vector.load %arg13[%c0_64, %c0_65] : memref<256x32xf32, #tpu.memory_space<vmem>>, vector<256x32xf32>
    %48 = arith.addf %47, %46 : vector<256x32xf32>
    %c0_66 = arith.constant 0 : index
    %c0_67 = arith.constant 0 : index
    %49 = vector.load %arg13[%c0_66, %c0_67] : memref<256x32xf32, #tpu.memory_space<vmem>>, vector<256x32xf32>
    tpu.vector_store %arg13[%c0_66, %c0_67], %48 {strides = array<i32>} : memref<256x32xf32, #tpu.memory_space<vmem>>, vector<256x32xf32>,
    %c0_68 = arith.constant 0 : index
    %c0_69 = arith.constant 0 : index
    %50 = vector.load %arg13[%c0_68, %c0_69] : memref<256x32xf32, #tpu.memory_space<vmem>>, vector<256x32xf32>
    %c0_70 = arith.constant 0 : index
    %c0_71 = arith.constant 0 : index
    %51 = vector.load %arg7[%c0_70, %c0_71] : memref<1x32xf32, #tpu.memory_space<vmem>>, vector<1x32xf32>
    %52 = vector.broadcast %51 : vector<1x32xf32> to vector<256x32xf32>
    %53 = arith.mulf %50, %52 : vector<256x32xf32>
    %c0_72 = arith.constant 0 : index
    %c0_73 = arith.constant 0 : index
    %54 = vector.load %arg8[%c0_72, %c0_73] : memref<1x32xf32, #tpu.memory_space<vmem>>, vector<1x32xf32>
    %55 = vector.broadcast %54 : vector<1x32xf32> to vector<256x32xf32>
    %56 = arith.addf %53, %55 : vector<256x32xf32>
    %cst_74 = arith.constant 0.000000e+00 : f32
    %57 = vector.broadcast %cst_74 : f32 to vector<256x32xf32>
    %58 = arith.maximumf %56, %57 : vector<256x32xf32>
    %59 = arith.truncf %58 : vector<256x32xf32> to vector<256x32xbf16>
    %c0_75 = arith.constant 0 : index
    %c0_76 = arith.constant 0 : index
    %60 = vector.load %arg4[%c0_75, %c0_76] : memref<32x128xbf16, #tpu.memory_space<vmem>>, vector<32x128xbf16>
    %cst_77 = arith.constant dense<0.000000e+00> : vector<256x128xf32>
    %61 = tpu.matmul %59, %60, %cst_77 {dimension_numbers = #tpu.dot_dimension_numbers<[1], [0], [0], [1], [0, 0, 1, 1], [], []>} : vector<256x32xbf16>, vector<32x128xbf16>, vector<256x128xf32> -> vector<256x128xf32>
    %c0_78 = arith.constant 0 : index
    %c0_79 = arith.constant 0 : index
    %62 = vector.load %arg9[%c0_78, %c0_79] : memref<1x128xf32, #tpu.memory_space<vmem>>, vector<1x128xf32>
    %63 = vector.broadcast %62 : vector<1x128xf32> to vector<256x128xf32>
    %64 = arith.mulf %61, %63 : vector<256x128xf32>
    %c0_80 = arith.constant 0 : index
    %c0_81 = arith.constant 0 : index
    %65 = vector.load %arg10[%c0_80, %c0_81] : memref<1x128xf32, #tpu.memory_space<vmem>>, vector<1x128xf32>
    %66 = vector.broadcast %65 : vector<1x128xf32> to vector<256x128xf32>
    %67 = arith.addf %64, %66 : vector<256x128xf32>
    %c0_82 = arith.constant 0 : index
    %c0_83 = arith.constant 0 : index
    %c0_84 = arith.constant 0 : index
    %c0_85 = arith.constant 0 : index
    %68 = vector.load %arg1[%c0_82, %c0_83, %c0_84, %c0_85] : memref<4x8x8x128xf32, #tpu.memory_space<vmem>>, vector<4x8x8x128xf32>
    %69 = vector.shape_cast %68 : vector<4x8x8x128xf32> to vector<256x128xf32>
    %70 = arith.addf %67, %69 : vector<256x128xf32>
    %cst_86 = arith.constant 0.000000e+00 : f32
    %71 = vector.broadcast %cst_86 : f32 to vector<256x128xf32>
    %72 = arith.maximumf %70, %71 : vector<256x128xf32>
    %73 = vector.shape_cast %72 : vector<256x128xf32> to vector<4x8x8x128xf32>
    %c0_87 = arith.constant 0 : index
    %c0_88 = arith.constant 0 : index
    %c0_89 = arith.constant 0 : index
    %c0_90 = arith.constant 0 : index
    %74 = vector.load %arg11[%c0_87, %c0_88, %c0_89, %c0_90] : memref<4x8x8x128xf32, #tpu.memory_space<vmem>>, vector<4x8x8x128xf32>
    tpu.vector_store %arg11[%c0_87, %c0_88, %c0_89, %c0_90], %73 {strides = array<i32>} : memref<4x8x8x128xf32, #tpu.memory_space<vmem>>, vector<4x8x8x128xf32>,
    return
  }
  func.func @transform_0(%arg0: i32) -> (i32, i32, i32, i32) {
    %c0_i32 = arith.constant 0 : i32
    %c0_i32_0 = arith.constant 0 : i32
    %c0_i32_1 = arith.constant 0 : i32
    %c0_i32_2 = arith.constant 0 : i32
    return %arg0, %c0_i32, %c0_i32_0, %c0_i32_1 : i32, i32, i32, i32
  }
  func.func @transform_1(%arg0: i32) -> (i32, i32) {
    %c0_i32 = arith.constant 0 : i32
    %c0_i32_0 = arith.constant 0 : i32
    %c0_i32_1 = arith.constant 0 : i32
    return %c0_i32, %c0_i32_0 : i32, i32
  }
  func.func @transform_2(%arg0: i32) -> (i32, i32, i32) {
    %c0_i32 = arith.constant 0 : i32
    %c0_i32_0 = arith.constant 0 : i32
    %c0_i32_1 = arith.constant 0 : i32
    %c0_i32_2 = arith.constant 0 : i32
    return %c0_i32, %c0_i32_0, %c0_i32_1 : i32, i32, i32
  }
  func.func @transform_3(%arg0: i32) -> (i32, i32) {
    %c0_i32 = arith.constant 0 : i32
    %c0_i32_0 = arith.constant 0 : i32
    %c0_i32_1 = arith.constant 0 : i32
    return %c0_i32, %c0_i32_0 : i32, i32
  }
  func.func @transform_4(%arg0: i32) -> (i32, i32) {
    %c0_i32 = arith.constant 0 : i32
    %c0_i32_0 = arith.constant 0 : i32
    %c0_i32_1 = arith.constant 0 : i32
    return %c0_i32, %c0_i32_0 : i32, i32
  }
  func.func @transform_5(%arg0: i32) -> (i32, i32) {
    %c0_i32 = arith.constant 0 : i32
    %c0_i32_0 = arith.constant 0 : i32
    %c0_i32_1 = arith.constant 0 : i32
    return %c0_i32, %c0_i32_0 : i32, i32
  }
  func.func @transform_6(%arg0: i32) -> (i32, i32) {
    %c0_i32 = arith.constant 0 : i32
    %c0_i32_0 = arith.constant 0 : i32
    %c0_i32_1 = arith.constant 0 : i32
    return %c0_i32, %c0_i32_0 : i32, i32
  }
  func.func @transform_7(%arg0: i32) -> (i32, i32) {
    %c0_i32 = arith.constant 0 : i32
    %c0_i32_0 = arith.constant 0 : i32
    %c0_i32_1 = arith.constant 0 : i32
    return %c0_i32, %c0_i32_0 : i32, i32
  }
  func.func @transform_8(%arg0: i32) -> (i32, i32) {
    %c0_i32 = arith.constant 0 : i32
    %c0_i32_0 = arith.constant 0 : i32
    %c0_i32_1 = arith.constant 0 : i32
    return %c0_i32, %c0_i32_0 : i32, i32
  }
  func.func @transform_9(%arg0: i32) -> (i32, i32) {
    %c0_i32 = arith.constant 0 : i32
    %c0_i32_0 = arith.constant 0 : i32
    %c0_i32_1 = arith.constant 0 : i32
    return %c0_i32, %c0_i32_0 : i32, i32
  }
  func.func @transform_10(%arg0: i32) -> (i32, i32, i32, i32) {
    %c0_i32 = arith.constant 0 : i32
    %c0_i32_0 = arith.constant 0 : i32
    %c0_i32_1 = arith.constant 0 : i32
    %c0_i32_2 = arith.constant 0 : i32
    return %arg0, %c0_i32, %c0_i32_0, %c0_i32_1 : i32, i32, i32, i32
  }
}

</mosaic_0001>

<bundles_post_ra>
// kernel: tpu_custom_call.1
= control target key start
LH: loop header
LB: loop body
LE: loop exit
PB: predicated region body
PF: predicated region fallthrough
CT: control target
= control target key end

     0   :  { %15 = vsyncpa [#allocation5], 0  ;;  %s4947_s0 = inlined_call_operand.hbm [shape: f32[8,8,8,128], index: 0, kind: input, shape index: {}]   ;;  %s4948_s1 = inlined_call_operand.vmem [shape: bf16[128,32], index: 1, kind: input, shape index: {}]   ;;  %s4949_s2 = inlined_call_operand.vmem [shape: bf16[3,96,32], index: 2, kind: input, shape index: {}]   ;;  %s4950_s3 = inlined_call_operand.vmem [shape: bf16[32,128], index: 3, kind: input, shape index: {}]   ;;  %s4951_s4 = inlined_call_operand.vmem [shape: f32[1,32], index: 4, kind: input, shape index: {}]   ;;  %s4952_s5 = inlined_call_operand.vmem [shape: f32[1,32], index: 5, kind: input, shape index: {}]   ;;  %s4953_s6 = inlined_call_operand.vmem [shape: f32[1,32], index: 6, kind: input, shape index: {}]   ;;  %s4954_s7 = inlined_call_operand.vmem [shape: f32[1,32], index: 7, kind: input, shape index: {}]   ;;  %s4955_s8 = inlined_call_operand.vmem [shape: f32[1,128], index: 8, kind: input, shape index: {}]   ;;  %s4956_s9 = inlined_call_operand.vmem [shape: f32[1,128], index: 9, kind: input, shape index: {}]   ;;  %s4957_s10 = inlined_call_operand.hbm [shape: f32[8,8,8,128], index: 10, kind: output, shape index: {}]  }
   0x1   :  { %17 = vsyncpa [#allocation5 + $0x1], 0 }
   0x2   :  { %18 = vsyncpa [#allocation6], 0 }
   0x3   :  { %20 = vsyncpa [#allocation6 + $0x1], 0  ;;  %s3702_s13 = smov 0   ;;  %s3704_s14 = smov 0  }
   0x4   :  { %s3706_s15 = smov 0   ;;  %s3708_s16 = smov 0  }
   0x5 LB: > { %4963 = sst [smem:[#allocation10_spill]] %s3632_s15  ;;  %s3723_s17 = sadd.s32 4294967295, %s3636_s16   ;;  %s3636_s16 = sphi %s3708_s16, %s4975_s16   ;;  %s3632_s15 = sphi %s3706_s15, %s4977_s15   ;;  %s3628_s14 = sphi %s3704_s14, %s4979_s14   ;;  %s3624_s13 = sphi %s3702_s13, %s4978_s13  }
   0x6   : > { %s2985_s18 = sadd.s32 4294967294, %s3636_s16   ;;  %s3727_s19 = sadd.s32 1, %s3636_s16  }
   0x7   : > { %4964 = sst [smem:[#allocation11_spill]] %s3727_s19  ;;  %s33_s20 = sadd.s32 1, %s3632_s15 }
   0x8   : > { %s30_s21 = ssub.s32 %s3636_s16, %s3727_s19  ;;  %p40_p0 = scmp.ne.s32.totalorder %s3632_s15, %s3628_s14 }
   0x9   : > { %p31_p1 = scmp.eq.s32.totalorder %s30_s21, 0  ;;  %p41_p2 = scmp.eq.s32.totalorder %s3636_s16, 0 }
   0xa   : > { %p46_p3 = scmp.ne.s32.totalorder %s3628_s14, %s3624_s13  ;;  %p47_p4 = scmp.eq.s32.totalorder %s3723_s17, 0 }
   0xb   : > { %s3739_s22 = scalar_select %p31_p1, %s3632_s15, %s33_s20  }
   0xc   : > { %p3741_p5 = por %p41_p2, %p40_p0  ;;  %p3745_p6 = por %p47_p4, %p46_p3 }
   0xd   : > { %4965 = sst [smem:[#allocation12_spill]] %s3739_s22  ;;  %p259_p7 = scmp.eq.s32.totalorder %s3723_s17, 1 }
   0xe   : > { %s4967_s24 = scalar_select %p3745_p6, 1, 0 }
   0xf   : > { %p265_p8 = scmp.eq.s32.totalorder %s2985_s18, 1  ;;  %p3475_p10 = scmp.lt.s32.totalorder %s3636_s16, 2 }
  0x10   : > { %p3752_p11 = por %p259_p7, %p40_p0  ;;  %s312_s27 = sand.u32 1, %s3632_s15  }
  0x11   : > { %p3756_p12 = por %p265_p8, %p46_p3  ;;  %s3124_s28 = sshll.u32 %s3636_s16, 12 }
  0x12   : > { %s4968_s25 = scalar_select %p3752_p11, 1, 0 }
  0x13   : > { %s4969_s26 = scalar_select %p3756_p12, 1, 0 }
  0x14   : > { %s2988_s29 = sshll.u32 %s312_s27, 8  ;;  %s3765_s12 = scalar_lea.hbm %s4947_s0, %s3124_s28 }
  0x15   : > { %s316_s18 = scalar_lea.vmem [#allocation4], %s2988_s29  ;;  %p3769_p13 = pnand %p3475_p10, %p3741_p5 }
  0x16   : > { %s324_s20 = sshll.u32 %s316_s18, 4  ;;  %s3775_s22 = scalar_lea.sflag [#allocation5], %s312_s27  ;;  %s3773_s20 = int_to_ptr.vmem [resolvable:$true] %s324_s20 }
  0x17   : > { %s3544_s15 = scalar_lea.hbm %s3765_s12, 4096  ;;  %p3546_p1 = pneg %p3769_p13 }
  0x18   : > { %p3545_p0 = scmp.ne.s32.totalorder %s3765_s12, %s3544_s15  ;;  %s3549_s29 = scalar_lea.hbm %s4947_s0, 8192 }
  0x19   : > { %p3550_p4 = scmp.lt.s32.totalorder %s3765_s12, %s4947_s0  ;;  %p3551_p5 = scmp.lt.s32.totalorder %s3549_s29, %s3544_s15 }
  0x1a   : > { %p3547_p2 = pnand %p3546_p1, %p3545_p0 }
  0x1b   : > { %p3552_p7 = por %p3551_p5, %p3550_p4 }
  0x1c   : > { %p3548_p3 = pneg %p3547_p2 }
  0x1e   : > { %p3553_p8 = pnand %p3552_p7, %p3548_p3 }
  0x20   : > { %3556 = shalt.err (!%p3553_p8)
}
  0x21   : > { %s3557_s27 = scalar_lea.vmem %s3773_s20, 4096  ;;  %s3638_s18 = smov [#allocation4]  }
  0x22   : > { %p3558_p10 = scmp.ne.s32.totalorder %s3773_s20, %s3557_s27  ;;  %s3562_s19 = sshll.u32 %s3638_s18, 4  ;;  %s3563_s19 = int_to_ptr.vmem [resolvable:$false] %s3562_s19 }
  0x23   : > { %s3564_s28 = scalar_lea.vmem %s3563_s19, 8192  ;;  %p3565_p2 = scmp.lt.s32.totalorder %s3773_s20, %s3563_s19 }
  0x24   : > { %p3560_p9 = pnand %p3558_p10, %p3546_p1  ;;  %p3566_p12 = scmp.lt.s32.totalorder %s3564_s28, %s3557_s27 }
  0x26   : > { %p3561_p0 = pneg %p3560_p9  ;;  %p3567_p11 = por %p3566_p12, %p3565_p2 }
  0x28   : > { %p3568_p6 = pnand %p3567_p11, %p3561_p0 }
  0x2a   : > { %3571 = shalt.err (!%p3568_p6)
}
  0x2b   : > { %s3639_s15 = smov 128   ;;  %s3640_s30 = smov 8  }
  0x2c   : > { %3470 = dma.hbm_to_vmem [thread:$0]  (!%p3769_p13), %s3765_s12, 4096, %s3773_s20, %s3775_s22, %s3639_s15, %s3639_s15, %s3640_s30  }
  0x2d   : > { %p2992_p9 = scmp.ge.s32.totalorder %s3636_s16, 1  ;;  %p332_p1 = scmp.lt.s32.totalorder %s3636_s16, 3 }
  0x2f   : > { %p333_p3 = pnand %p2992_p9, %p332_p1 }
  0x30   : > { %s3799_s19 = sand.u32 (!%p333_p3), 1, %s3628_s14   ;;  %p4971_p6 = scmp.ne.s32.totalorder (!%p333_p3), %s4967_s24, 0 }
  0x31   : > { %336 = sbr.rel (%p333_p3) target bundleno = 1023 (0x3ff), region = 60  ;;  %s2993_s29 = sshll.u32 (!%p333_p3), %s3799_s19, 8 }
  0x32   : > { %s339_s23 = scalar_lea.sflag (!%p333_p3), [#allocation5], %s3799_s19  ;;  %s3805_s11 = scalar_lea.vmem (!%p333_p3), [#allocation4], %s2993_s29 }
  0x36   : > { %3615 = dma.done.wait (%p4971_p6), %s339_s23, 4096  }
  0x37   : > { %3617 = vsyncadd (%p4971_p6), %s339_s23, 4294963200  ;;  %v3516_v0 = vld [vmem:[%s4948_s1 + $0x38] sm:$0xff]   ;;  %v3517_v1 = vld [vmem:[%s4948_s1 + $0x30] sm:$0xff]   ;;  %vm776_vm0 = vcmask 253952   ;;  %v3641_v56 = vmov 0.0   ;;  %vm765_vm1 = vcmask 785408  }
  0x38   : > { %3235 = vmatprep.subr.bf16.mxu0 %v3516_v0  ;;  %v3518_v2 = vld [vmem:[%s4948_s1 + $0x28] sm:$0xff]   ;;  %v3519_v3 = vld [vmem:[%s4948_s1 + $0x20] sm:$0xff]   ;;  %v3520_v7 = vld [vmem:[%s4948_s1 + $0x18] sm:$0xff]   ;;  %779 = vst.msk [vmem:[#allocation2 + $0x18] sm:$0x1] %vm776_vm0, %v3641_v56  ;;  %vm809_vm2 = vcmask 260096  }
  0x39   : > { %3236 = vmatpush3.bf16.msra.mxu0 %v3516_v0  ;;  %v382_v4 = vld [vmem:[%s3805_s11] sm:$0xff]  ;;  %v383_v5 = vld [vmem:[%s3805_s11 + $0x8] sm:$0xff]  ;;  %v3521_v8 = vld [vmem:[%s4948_s1 + $0x10] sm:$0xff]   ;;  %777 = vst.msk [vmem:[#allocation2 + $0x8] sm:$0x1] %vm776_vm0, %v3641_v56  ;;  %s3642_s24 = smov 64  }
  0x3a   : > { %3237 = vmatprep.subr.bf16.mxu0 %v3517_v1  ;;  %v414_v6 = vpack.c.bf16 %v383_v5, %v382_v4  ;;  %v3522_v9 = vld [vmem:[%s4948_s1 + $0x8] sm:$0xff]   ;;  %v3523_v10 = vld [vmem:[%s4948_s1] sm:$0xff]   ;;  %v384_v11 = vld [vmem:[%s3805_s11 + $0x10] sm:$0xff]  ;;  %778 = vst.msk [vmem:[#allocation2 + $0x10] sm:$0x1] %vm776_vm0, %v3641_v56  ;;  %s3643_s28 = smov 32  }
  0x3b   : > { %v385_v12 = vld [vmem:[%s3805_s11 + $0x18] sm:$0xff]  ;;  %v386_v13 = vld [vmem:[%s3805_s11 + $0x20] sm:$0xff]  ;;  %v387_v14 = vld [vmem:[%s3805_s11 + $0x28] sm:$0xff]  ;;  %780 = vst.msk [vmem:[#allocation2 + $0x20] sm:$0x1] %vm776_vm0, %v3641_v56  ;;  %vm970_vm3 = vcmask 523520  }
  0x3c   : > { %3251 = vmatprep.mubr.bf16.mxu0 %v414_v6  ;;  %v415_v15 = vpack.c.bf16 %v385_v12, %v384_v11  ;;  %v416_v16 = vpack.c.bf16 %v387_v14, %v386_v13  ;;  %v388_v17 = vld [vmem:[%s3805_s11 + $0x30] sm:$0xff]  ;;  %v389_v18 = vld [vmem:[%s3805_s11 + $0x38] sm:$0xff]  ;;  %v390_v19 = vld [vmem:[%s3805_s11 + $0x40] sm:$0xff]  ;;  %781 = vst.msk [vmem:[#allocation2 + $0x28] sm:$0x1] %vm776_vm0, %v3641_v56  ;;  %vm1099_vm4 = vcmask 785921  }
  0x3d   : > { %3238 = vmatpush3.bf16.msra.mxu0 %v3517_v1  ;;  %v391_v20 = vld [vmem:[%s3805_s11 + $0x48] sm:$0xff]  ;;  %v417_v21 = vpack.c.bf16 %v389_v18, %v388_v17  ;;  %v392_v23 = vld [vmem:[%s3805_s11 + $0x50] sm:$0xff]  ;;  %v393_v24 = vld [vmem:[%s3805_s11 + $0x58] sm:$0xff]  ;;  %782 = vst.msk [vmem:[#allocation2 + $0x30] sm:$0x1] %vm776_vm0, %v3641_v56  ;;  %vm1132_vm5 = vcmask 778752  }
  0x3e   : > { %3239 = vmatprep.subr.bf16.mxu0 %v3518_v2  ;;  %v418_v22 = vpack.c.bf16 %v391_v20, %v390_v19  ;;  %v394_v25 = vld [vmem:[%s3805_s11 + $0x60] sm:$0xff]  ;;  %v395_v26 = vld [vmem:[%s3805_s11 + $0x68] sm:$0xff]  ;;  %v419_v27 = vpack.c.bf16 %v393_v24, %v392_v23  ;;  %v396_v29 = vld [vmem:[%s3805_s11 + $0x70] sm:$0xff]  ;;  %783 = vst.msk [vmem:[#allocation2 + $0x38] sm:$0x1] %vm776_vm0, %v3641_v56  ;;  %vm1470_vm6 = vcmask 261120  }
  0x3f   : > { %v420_v28 = vpack.c.bf16 %v395_v26, %v394_v25  ;;  %v397_v30 = vld [vmem:[%s3805_s11 + $0x78] sm:$0xff]  ;;  %v398_v31 = vld [vmem:[%s3805_s11 + $0x80] sm:$0xff]  ;;  %v399_v32 = vld [vmem:[%s3805_s11 + $0x88] sm:$0xff]  ;;  %784 = vst.msk [vmem:[#allocation2 + $0x40] sm:$0x1] %vm776_vm0, %v3641_v56  ;;  %s4778_s27 = scalar_lea.vmem [#allocation7], %s2993_s29 }
  0x40   : > { %v421_v33 = vpack.c.bf16 %v397_v30, %v396_v29  ;;  %v422_v34 = vpack.c.bf16 %v399_v32, %v398_v31  ;;  %v400_v35 = vld [vmem:[%s3805_s11 + $0x90] sm:$0xff]  ;;  %v401_v36 = vld [vmem:[%s3805_s11 + $0x98] sm:$0xff]  ;;  %v402_v37 = vld [vmem:[%s3805_s11 + $0xa0] sm:$0xff]  ;;  %785 = vst.msk [vmem:[#allocation2 + $0x58] sm:$0x1] %vm776_vm0, %v3641_v56  ;;  %s3126_s29 = sshll.u32 %s3723_s17, 12 }
  0x41   : > { %3240 = vmatpush3.bf16.msra.mxu0 %v3518_v2  ;;  %v403_v38 = vld [vmem:[%s3805_s11 + $0xa8] sm:$0xff]  ;;  %v423_v39 = vpack.c.bf16 %v401_v36, %v400_v35  ;;  %v404_v41 = vld [vmem:[%s3805_s11 + $0xb0] sm:$0xff]  ;;  %v405_v42 = vld [vmem:[%s3805_s11 + $0xb8] sm:$0xff]  ;;  %786 = vst.msk [vmem:[#allocation2 + $0x60] sm:$0x1] %vm776_vm0, %v3641_v56  ;;  %s2912_s18 = sshll.u32 %s4778_s27, 4  ;;  %s4900_s15 = scalar_lea.hbm %s4957_s10, %s3126_s29  ;;  %s4902_s18 = int_to_ptr.vmem [resolvable:$true] %s2912_s18 }
  0x42   : > { %3241 = vmatprep.subr.bf16.mxu0 %v3519_v3  ;;  %v424_v40 = vpack.c.bf16 %v403_v38, %v402_v37  ;;  %v406_v43 = vld [vmem:[%s3805_s11 + $0xc0] sm:$0xff]  ;;  %v407_v44 = vld [vmem:[%s3805_s11 + $0xc8] sm:$0xff]  ;;  %v425_v45 = vpack.c.bf16 %v405_v42, %v404_v41  ;;  %v408_v47 = vld [vmem:[%s3805_s11 + $0xd0] sm:$0xff]  ;;  %787 = vst.msk [vmem:[#allocation2 + $0x68] sm:$0x1] %vm776_vm0, %v3641_v56  ;;  %s3572_s30 = scalar_lea.vmem %s4902_s18, 4096 }
  0x43   : > { %v426_v46 = vpack.c.bf16 %v407_v44, %v406_v43  ;;  %v409_v48 = vld [vmem:[%s3805_s11 + $0xd8] sm:$0xff]  ;;  %v410_v49 = vld [vmem:[%s3805_s11 + $0xe0] sm:$0xff]  ;;  %v411_v50 = vld [vmem:[%s3805_s11 + $0xe8] sm:$0xff]  ;;  %788 = vst.msk [vmem:[#allocation2 + $0x70] sm:$0x1] %vm776_vm0, %v3641_v56  ;;  %p3573_p11 = scmp.ne.s32.totalorder %s4902_s18, %s3572_s30  ;;  %p4972_p12 = scmp.ne.s32.totalorder %s4968_s25, 0 }
  0x44   : > { %v427_v51 = vpack.c.bf16 %v409_v48, %v408_v47  ;;  %v428_v52 = vpack.c.bf16 %v411_v50, %v410_v49  ;;  %v412_v53 = vld [vmem:[%s3805_s11 + $0xf0] sm:$0xff]  ;;  %v413_v54 = vld [vmem:[%s3805_s11 + $0xf8] sm:$0xff]  ;;  %789 = vst.msk [vmem:[#allocation2 + $0x78] sm:$0x1] %vm776_vm0, %v3641_v56  ;;  %790 = vst.msk [vmem:[#allocation2 + $0x80] sm:$0x1] %vm776_vm0, %v3641_v56 }
  0x45   : > { %3242 = vmatpush3.bf16.msra.mxu0 %v3519_v3  ;;  %v429_v55 = vpack.c.bf16 %v413_v54, %v412_v53  ;;  %791 = vst.msk [vmem:[#allocation2 + $0x88] sm:$0x1] %vm776_vm0, %v3641_v56  ;;  %792 = vst.msk [vmem:[#allocation2 + $0x90] sm:$0x1] %vm776_vm0, %v3641_v56  ;;  %v3524_v57 = vld [vmem:[%s4949_s2 + $0x28] sm:$0xff]   ;;  %v3525_v59 = vld [vmem:[%s4949_s2 + $0x20] sm:$0xff]   ;;  %p3574_p13 = pnand %p3573_p11, %p4972_p12 }
  0x46   : > { %3243 = vmatprep.subr.bf16.mxu0 %v3520_v7  ;;  %793 = vst.msk [vmem:[#allocation2 + $0xa8] sm:$0x1] %vm776_vm0, %v3641_v56  ;;  %794 = vst.msk [vmem:[#allocation2 + $0xb0] sm:$0x1] %vm776_vm0, %v3641_v56  ;;  %3451 = vmatprep.subr.bf16.mxu1 %v3524_v57  ;;  %v3937_v58 = vld [vmem:[%s4951_s4] ss:$0 sm:$0xff] }
  0x47   : > { %795 = vst.msk [vmem:[#allocation2 + $0xb8] sm:$0x1] %vm776_vm0, %v3641_v56  ;;  %796 = vst.msk [vmem:[#allocation2 + $0xc0] sm:$0x1] %vm776_vm0, %v3641_v56  ;;  %3457 = vmatpush3.bf16.msra.mxu1 %v3524_v57  ;;  %v3961_v61 = vld [vmem:[%s4952_s5] ss:$0 sm:$0xff]  ;;  %p3575_p4 = pneg %p3574_p13 }
  0x48   : > { %797 = vst.msk [vmem:[#allocation2 + $0xc8] sm:$0x1] %vm776_vm0, %v3641_v56  ;;  %798 = vst.msk [vmem:[#allocation2 + $0xd0] sm:$0x1] %vm776_vm0, %v3641_v56  ;;  %3452 = vmatprep.subr.bf16.mxu1 %v3525_v59  ;;  %v3526_v0 = vld [vmem:[%s4949_s2 + $0x18] sm:$0xff]   ;;  %v3528_v17 = vld [vmem:[%s4949_s2 + $0x8] sm:$0xff]  }
  0x49   : > { %3244 = vmatpush3.bf16.msra.mxu0 %v3520_v7  ;;  %799 = vst.msk [vmem:[#allocation2 + $0xd8] sm:$0x1] %vm776_vm0, %v3641_v56  ;;  %800 = vst.msk [vmem:[#allocation2 + $0xe0] sm:$0x1] %vm776_vm0, %v3641_v56  ;;  %v3529_v26 = vld [vmem:[%s4949_s2] sm:$0xff]   ;;  %s3644_s17 = smov [#allocation7]  }
  0x4a   : > { %3245 = vmatprep.subr.bf16.mxu0 %v3521_v8  ;;  %801 = vst.msk [vmem:[#allocation2 + $0xf8] sm:$0x1] %vm776_vm0, %v3641_v56  ;;  %802 = vst.msk [vmem:[#allocation2 + $0x100] sm:$0x1] %vm776_vm0, %v3641_v56  ;;  %s3576_s23 = sshll.u32 %s3644_s17, 4  ;;  %s3577_s23 = int_to_ptr.vmem [resolvable:$false] %s3576_s23 }
  0x4b   : > { %803 = vst.msk [vmem:[#allocation2 + $0x108] sm:$0x1] %vm776_vm0, %v3641_v56  ;;  %804 = vst.msk [vmem:[#allocation2 + $0x110] sm:$0x1] %vm776_vm0, %v3641_v56  ;;  %3458 = vmatpush3.bf16.msra.mxu1 %v3525_v59  ;;  %s3578_s22 = scalar_lea.vmem %s3577_s23, 8192  ;;  %p3579_p5 = scmp.lt.s32.totalorder %s4902_s18, %s3577_s23 }
  0x4c   : > { %805 = vst.msk [vmem:[#allocation2 + $0x118] sm:$0x1] %vm776_vm0, %v3641_v56  ;;  %806 = vst.msk [vmem:[#allocation2 + $0x120] sm:$0x1] %vm776_vm0, %v3641_v56  ;;  %3453 = vmatprep.subr.bf16.mxu1 %v3526_v0  ;;  %p3580_p7 = scmp.lt.s32.totalorder %s3578_s22, %s3572_s30 }
  0x4d   : > { %3246 = vmatpush3.bf16.msra.mxu0 %v3521_v8  ;;  %807 = vst.msk [vmem:[#allocation2 + $0x128] sm:$0x1] %vm776_vm0, %v3641_v56  ;;  %808 = vst.msk [vmem:[#allocation2 + $0x130] sm:$0x1] %vm776_vm0, %v3641_v56  ;;  %v3527_v8 = vld [vmem:[%s4949_s2 + $0x10] sm:$0xff]  }
  0x4e   : > { %3247 = vmatprep.subr.bf16.mxu0 %v3522_v9  ;;  %766 = vst.msk [vmem:[#allocation2] sm:$0xff] %vm765_vm1, %v3641_v56  ;;  %767 = vst.msk [vmem:[#allocation2 + $0x50] sm:$0xff] %vm765_vm1, %v3641_v56  ;;  %p3581_p8 = por %p3580_p7, %p3579_p5 }
  0x4f   : > { %768 = vst.msk [vmem:[#allocation2 + $0xa0] sm:$0xff] %vm765_vm1, %v3641_v56  ;;  %769 = vst.msk [vmem:[#allocation2 + $0xf0] sm:$0xff] %vm765_vm1, %v3641_v56  ;;  %3459 = vmatpush3.bf16.msra.mxu1 %v3526_v0 }
  0x50   : > { %771 = vst.msk [vmem:[#allocation2 + $0x48] sm:$0xff] %vm765_vm1, %v3641_v56  ;;  %772 = vst.msk [vmem:[#allocation2 + $0x98] sm:$0xff] %vm765_vm1, %v3641_v56  ;;  %3454 = vmatprep.subr.bf16.mxu1 %v3527_v8  ;;  %p3582_p10 = pnand %p3581_p8, %p3575_p4 }
  0x51   : > { %3248 = vmatpush3.bf16.msra.mxu0 %v3522_v9  ;;  %773 = vst.msk [vmem:[#allocation2 + $0xe8] sm:$0xff] %vm765_vm1, %v3641_v56  ;;  %774 = vst.msk [vmem:[#allocation2 + $0x138] sm:$0xff] %vm765_vm1, %v3641_v56 }
  0x52   : > { %3249 = vmatprep.subr.bf16.mxu0 %v3523_v10 }
  0x53   : > { %3460 = vmatpush3.bf16.msra.mxu1 %v3527_v8 }
  0x54   : > { %3455 = vmatprep.subr.bf16.mxu1 %v3528_v17 }
  0x55   : > { %3250 = vmatpush3.bf16.msra.mxu0 %v3523_v10 }
  0x56   : > { %3283 = vmatprep.subr.bf16.mxu0 %v3524_v57 }
  0x57   : > { %3461 = vmatpush3.bf16.msra.mxu1 %v3528_v17 }
  0x58   : > { %3252 = vmatmul.mubr.bf16.vlgmr.msra.gmra.mxu0 %v415_v15  ;;  %3456 = vmatprep.subr.bf16.mxu1 %v3529_v26 }
  0x59   : > { %3255 = vmatprep.mubr.bf16.mxu0 %v416_v16  ;;  %3284 = vmatpush3.bf16.msra.mxu0 %v3524_v57 }
  0x5a   : > { %3285 = vmatprep.subr.bf16.mxu0 %v3525_v59 }
  0x5b   : > { %3462 = vmatpush3.bf16.msra.mxu1 %v3529_v26 }
  0x5d   : > { %3286 = vmatpush3.bf16.msra.mxu0 %v3525_v59 }
  0x5e   : > { %3287 = vmatprep.subr.bf16.mxu0 %v3526_v0 }
  0x60   : > { %3256 = vmatmul.mubr.bf16.gmra.mxu0 %v417_v21 }
  0x61   : > { %3259 = vmatprep.mubr.bf16.mxu0 %v418_v22  ;;  %3288 = vmatpush3.bf16.msra.mxu0 %v3526_v0 }
  0x62   : > { %3289 = vmatprep.subr.bf16.mxu0 %v3527_v8 }
  0x65   : > { %3290 = vmatpush3.bf16.msra.mxu0 %v3527_v8 }
  0x66   : > { %3291 = vmatprep.subr.bf16.mxu0 %v3528_v17 }
  0x68   : > { %3260 = vmatmul.mubr.bf16.gmra.mxu0 %v419_v27 }
  0x69   : > { %3263 = vmatprep.mubr.bf16.mxu0 %v420_v28  ;;  %3292 = vmatpush3.bf16.msra.mxu0 %v3528_v17 }
  0x6a   : > { %3293 = vmatprep.subr.bf16.mxu0 %v3529_v26 }
  0x6d   : > { %3294 = vmatpush3.bf16.msra.mxu0 %v3529_v26 }
  0x70   : > { %3264 = vmatmul.mubr.bf16.gmra.mxu0 %v421_v33 }
  0x71   : > { %3267 = vmatprep.mubr.bf16.mxu0 %v422_v34 }
  0x78   : > { %3268 = vmatmul.mubr.bf16.gmra.mxu0 %v423_v39 }
  0x79   : > { %3271 = vmatprep.mubr.bf16.mxu0 %v424_v40 }
  0x80   : > { %3272 = vmatmul.mubr.bf16.gmra.mxu0 %v425_v45 }
  0x81   : > { %3275 = vmatprep.mubr.bf16.mxu0 %v426_v46 }
  0x88   : > { %3276 = vmatmul.mubr.bf16.gmra.mxu0 %v427_v51 }
  0x89   : > { %3279 = vmatprep.mubr.bf16.mxu0 %v428_v52 }
  0x90   : > { %3280 = vmatmul.mubr.bf16.gmra.mxu0 %v429_v55 }
 0x118   : > { %v3253_v60 = vpop.f32.mrf.mxu0 }
 0x119   : > { %v664_v62 = vmul.f32 %v3253_v60, %v3937_v58 }
 0x11a   : > { %v528_v63 = vpop.f32.mrf.mxu0 }
 0x11b   : > { %v703_v1 = vadd.f32 %v3961_v61, %v664_v62  ;;  %v662_v2 = vmul.f32 %v3937_v58, %v528_v63 }
 0x11c   : > { %v3254_v3 = vpop.f32.mrf.mxu0 }
 0x11d   : > { %v735_v4 = vmax.f32 %v703_v1, 0.0  ;;  %v701_v5 = vadd.f32 %v3961_v61, %v662_v2  ;;  %v665_v6 = vmul.f32 %v3254_v3, %v3937_v58 }
 0x11e   : > { %v531_v7 = vpop.f32.mrf.mxu0 }
 0x11f   : > { %812 = vst.msk [vmem:[#allocation2 + $0x19] sm:$0x7f] %vm809_vm2, %v735_v4  ;;  %v733_v9 = vmax.f32 %v701_v5, 0.0  ;;  %v704_v10 = vadd.f32 %v3961_v61, %v665_v6  ;;  %v663_v11 = vmul.f32 %v3937_v58, %v531_v7  ;;  %1007 = vrot.lane.b32.xlu1 %v735_v4, %s3642_s24  ;;  %878 = vrot.lane.b32.xlu0 %v735_v4, %s3643_s28 }
 0x120   : > { %v3257_v12 = vpop.f32.mrf.mxu0 }
 0x121   : > { %810 = vst.msk [vmem:[#allocation2 + $0x9] sm:$0x7f] %vm809_vm2, %v733_v9  ;;  %v736_v13 = vmax.f32 %v704_v10, 0.0  ;;  %v702_v14 = vadd.f32 %v3961_v61, %v663_v11  ;;  %v668_v15 = vmul.f32 %v3257_v12, %v3937_v58 }
 0x122   : > { %v544_v16 = vpop.f32.mrf.mxu0 }
 0x123   : > { %813 = vst.msk [vmem:[#allocation2 + $0x21] sm:$0x7f] %vm809_vm2, %v736_v13  ;;  %v734_v18 = vmax.f32 %v702_v14, 0.0  ;;  %v707_v19 = vadd.f32 %v3961_v61, %v668_v15  ;;  %v666_v20 = vmul.f32 %v3937_v58, %v544_v16  ;;  %1003 = vrot.lane.b32.xlu1 %v733_v9, %s3642_s24  ;;  %874 = vrot.lane.b32.xlu0 %v733_v9, %s3643_s28 }
 0x124   : > { %v3258_v21 = vpop.f32.mrf.mxu0 }
 0x125   : > { %811 = vst.msk [vmem:[#allocation2 + $0x11] sm:$0x7f] %vm809_vm2, %v734_v18  ;;  %v739_v22 = vmax.f32 %v707_v19, 0.0  ;;  %v705_v23 = vadd.f32 %v3961_v61, %v666_v20  ;;  %v669_v24 = vmul.f32 %v3258_v21, %v3937_v58 }
 0x126   : > { %v547_v25 = vpop.f32.mrf.mxu0 }
 0x127   : > { %816 = vst.msk [vmem:[#allocation2 + $0x39] sm:$0x7f] %vm809_vm2, %v739_v22  ;;  %v737_v27 = vmax.f32 %v705_v23, 0.0  ;;  %v708_v28 = vadd.f32 %v3961_v61, %v669_v24  ;;  %v667_v29 = vmul.f32 %v3937_v58, %v547_v25  ;;  %880 = vrot.lane.b32.xlu0 %v736_v13, %s3643_s28  ;;  %876 = vrot.lane.b32.xlu1 %v734_v18, %s3643_s28 }
 0x128   : > { %v3261_v30 = vpop.f32.mrf.mxu0 }
 0x129   : > { %814 = vst.msk [vmem:[#allocation2 + $0x29] sm:$0x7f] %vm809_vm2, %v737_v27  ;;  %v4002_v31 = vmax.f32 %v708_v28, 0.0  ;;  %v706_v32 = vadd.f32 %v3961_v61, %v667_v29  ;;  %v672_v33 = vmul.f32 %v3261_v30, %v3937_v58 }
 0x12a   : > { %v560_v34 = vpop.f32.mrf.mxu0 }
 0x12b   : > { %817 = vst.msk [vmem:[#allocation2 + $0x41] sm:$0x7f] %vm809_vm2, %v4002_v31  ;;  %v738_v35 = vmax.f32 %v706_v32, 0.0  ;;  %v711_v36 = vadd.f32 %v3961_v61, %v672_v33  ;;  %v670_v37 = vmul.f32 %v3937_v58, %v560_v34  ;;  %1009 = vrot.lane.b32.xlu0 %v736_v13, %s3642_s24  ;;  %886 = vrot.lane.b32.xlu1 %v739_v22, %s3643_s28 }
 0x12c   : > { %v3262_v38 = vpop.f32.mrf.mxu0 }
 0x12d   : > { %815 = vst.msk [vmem:[#allocation2 + $0x31] sm:$0x7f] %vm809_vm2, %v738_v35  ;;  %v4013_v39 = vmax.f32 %v711_v36, 0.0  ;;  %v709_v40 = vadd.f32 %v3961_v61, %v670_v37  ;;  %v673_v41 = vmul.f32 %v3262_v38, %v3937_v58 }
 0x12e   : > { %v563_v42 = vpop.f32.mrf.mxu0 }
 0x12f   : > { %820 = vst.msk [vmem:[#allocation2 + $0x69] sm:$0x7f] %vm809_vm2, %v4013_v39  ;;  %v4019_v43 = vmax.f32 %v709_v40, 0.0  ;;  %v712_v44 = vadd.f32 %v3961_v61, %v673_v41  ;;  %v671_v45 = vmul.f32 %v3937_v58, %v563_v42  ;;  %1005 = vrot.lane.b32.xlu0 %v734_v18, %s3642_s24  ;;  %1015 = vrot.lane.b32.xlu1 %v739_v22, %s3642_s24 }
 0x130   : > { %v3265_v46 = vpop.f32.mrf.mxu0 }
 0x131   : > { %818 = vst.msk [vmem:[#allocation2 + $0x59] sm:$0x7f] %vm809_vm2, %v4019_v43  ;;  %v744_v47 = vmax.f32 %v712_v44, 0.0  ;;  %v710_v48 = vadd.f32 %v3961_v61, %v671_v45  ;;  %v676_v49 = vmul.f32 %v3265_v46, %v3937_v58 }
 0x132   : > { %v576_v50 = vpop.f32.mrf.mxu0 }
 0x133   : > { %821 = vst.msk [vmem:[#allocation2 + $0x71] sm:$0x7f] %vm809_vm2, %v744_v47  ;;  %v4030_v51 = vmax.f32 %v710_v48, 0.0  ;;  %v715_v52 = vadd.f32 %v3961_v61, %v676_v49  ;;  %v674_v53 = vmul.f32 %v3937_v58, %v576_v50  ;;  %882 = vrot.lane.b32.xlu1 %v737_v27, %s3643_s28  ;;  %884 = vrot.lane.b32.xlu0 %v738_v35, %s3643_s28 }
 0x134   : > { %v3266_v54 = vpop.f32.mrf.mxu0 }
 0x135   : > { %819 = vst.msk [vmem:[#allocation2 + $0x61] sm:$0x7f] %vm809_vm2, %v4030_v51  ;;  %v747_v55 = vmax.f32 %v715_v52, 0.0  ;;  %v713_v57 = vadd.f32 %v3961_v61, %v674_v53  ;;  %v677_v59 = vmul.f32 %v3266_v54, %v3937_v58 }
 0x136   : > { %v579_v60 = vpop.f32.mrf.mxu0 }
 0x137   : > { %824 = vst.msk [vmem:[#allocation2 + $0x89] sm:$0x7f] %vm809_vm2, %v747_v55  ;;  %v745_v62 = vmax.f32 %v713_v57, 0.0  ;;  %v716_v63 = vadd.f32 %v3961_v61, %v677_v59  ;;  %v675_v0 = vmul.f32 %v3937_v58, %v579_v60  ;;  %1011 = vrot.lane.b32.xlu1 %v737_v27, %s3642_s24  ;;  %1013 = vrot.lane.b32.xlu0 %v738_v35, %s3642_s24 }
 0x138   : > { %v3269_v1 = vpop.f32.mrf.mxu0 }
 0x139   : > { %822 = vst.msk [vmem:[#allocation2 + $0x79] sm:$0x7f] %vm809_vm2, %v745_v62  ;;  %v4046_v2 = vmax.f32 %v716_v63, 0.0  ;;  %v714_v3 = vadd.f32 %v3961_v61, %v675_v0  ;;  %v680_v4 = vmul.f32 %v3269_v1, %v3937_v58 }
 0x13a   : > { %v592_v5 = vpop.f32.mrf.mxu0 }
 0x13b   : > { %825 = vst.msk [vmem:[#allocation2 + $0x91] sm:$0x7f] %vm809_vm2, %v4046_v2  ;;  %v746_v6 = vmax.f32 %v714_v3, 0.0  ;;  %896 = vrot.lane.b32.xlu0 %v744_v47, %s3643_s28  ;;  %902 = vrot.lane.b32.xlu1 %v747_v55, %s3643_s28  ;;  %v719_v7 = vadd.f32 %v3961_v61, %v680_v4  ;;  %v678_v8 = vmul.f32 %v3937_v58, %v592_v5 }
 0x13c   : > { %v3270_v9 = vpop.f32.mrf.mxu0 }
 0x13d   : > { %823 = vst.msk [vmem:[#allocation2 + $0x81] sm:$0x7f] %vm809_vm2, %v746_v6  ;;  %v751_v10 = vmax.f32 %v719_v7, 0.0  ;;  %v717_v11 = vadd.f32 %v3961_v61, %v678_v8  ;;  %v681_v12 = vmul.f32 %v3270_v9, %v3937_v58 }
 0x13e   : > { %v595_v13 = vpop.f32.mrf.mxu0 }
 0x13f   : > { %828 = vst.msk [vmem:[#allocation2 + $0xb9] sm:$0x7f] %vm809_vm2, %v751_v10  ;;  %1025 = vrot.lane.b32.xlu0 %v744_v47, %s3642_s24  ;;  %1031 = vrot.lane.b32.xlu1 %v747_v55, %s3642_s24  ;;  %v749_v14 = vmax.f32 %v717_v11, 0.0  ;;  %v720_v15 = vadd.f32 %v3961_v61, %v681_v12  ;;  %v679_v16 = vmul.f32 %v3937_v58, %v595_v13  ;;  %v4133_v12 = vld [vmem:[%s4949_s2 + $0x58] sm:$0xff]  }
 0x140   : > { %v3273_v17 = vpop.f32.mrf.mxu0  ;;  %3327 = vmatprep.subr.bf16.mxu1 %v4133_v12 }
 0x141   : > { %826 = vst.msk [vmem:[#allocation2 + $0xa9] sm:$0x7f] %vm809_vm2, %v749_v14  ;;  %v4065_v18 = vmax.f32 %v720_v15, 0.0  ;;  %v718_v19 = vadd.f32 %v3961_v61, %v679_v16  ;;  %v684_v20 = vmul.f32 %v3273_v17, %v3937_v58 }
 0x142   : > { %v608_v21 = vpop.f32.mrf.mxu0 }
 0x143   : > { %829 = vst.msk [vmem:[#allocation2 + $0xc1] sm:$0x7f] %vm809_vm2, %v4065_v18  ;;  %1027 = vrot.lane.b32.xlu1 %v745_v62, %s3642_s24  ;;  %898 = vrot.lane.b32.xlu0 %v745_v62, %s3643_s28  ;;  %v4073_v22 = vmax.f32 %v718_v19, 0.0  ;;  %v723_v23 = vadd.f32 %v3961_v61, %v684_v20  ;;  %v682_v24 = vmul.f32 %v3937_v58, %v608_v21 }
 0x144   : > { %v3274_v25 = vpop.f32.mrf.mxu0 }
 0x145   : > { %827 = vst.msk [vmem:[#allocation2 + $0xb1] sm:$0x7f] %vm809_vm2, %v4073_v22  ;;  %v755_v26 = vmax.f32 %v723_v23, 0.0  ;;  %v721_v27 = vadd.f32 %v3961_v61, %v682_v24  ;;  %v685_v28 = vmul.f32 %v3274_v25, %v3937_v58 }
 0x146   : > { %v611_v29 = vpop.f32.mrf.mxu0 }
 0x147   : > { %1029 = vrot.lane.b32.xlu0 %v746_v6, %s3642_s24  ;;  %900 = vrot.lane.b32.xlu1 %v746_v6, %s3643_s28  ;;  %832 = vst.msk [vmem:[#allocation2 + $0xd9] sm:$0x7f] %vm809_vm2, %v755_v26  ;;  %v753_v30 = vmax.f32 %v721_v27, 0.0  ;;  %v724_v32 = vadd.f32 %v3961_v61, %v685_v28  ;;  %v683_v33 = vmul.f32 %v3937_v58, %v611_v29  ;;  %v3536_v29 = vld [vmem:[%s4949_s2 + $0x80] sm:$0xff]  }
 0x148   : > { %v3277_v34 = vpop.f32.mrf.mxu0 }
 0x149   : > { %830 = vst.msk [vmem:[#allocation2 + $0xc9] sm:$0x7f] %vm809_vm2, %v753_v30  ;;  %v4087_v35 = vmax.f32 %v724_v32, 0.0  ;;  %v722_v36 = vadd.f32 %v3961_v61, %v683_v33  ;;  %v688_v37 = vmul.f32 %v3277_v34, %v3937_v58  ;;  %v3538_v34 = vld [vmem:[%s4949_s2 + $0x78] sm:$0xff]  }
 0x14a   : > { %v624_v38 = vpop.f32.mrf.mxu0 }
 0x14b   : > { %1039 = vrot.lane.b32.xlu1 %v751_v10, %s3642_s24  ;;  %910 = vrot.lane.b32.xlu0 %v751_v10, %s3643_s28  ;;  %833 = vst.msk [vmem:[#allocation2 + $0xe1] sm:$0x7f] %vm809_vm2, %v4087_v35  ;;  %v754_v40 = vmax.f32 %v722_v36, 0.0  ;;  %v727_v41 = vadd.f32 %v3961_v61, %v688_v37  ;;  %v686_v42 = vmul.f32 %v3937_v58, %v624_v38 }
 0x14c   : > { %v3278_v44 = vpop.f32.mrf.mxu0 }
 0x14d   : > { %831 = vst.msk [vmem:[#allocation2 + $0xd1] sm:$0x7f] %vm809_vm2, %v754_v40  ;;  %v759_v45 = vmax.f32 %v727_v41, 0.0  ;;  %v725_v46 = vadd.f32 %v3961_v61, %v686_v42  ;;  %v689_v47 = vmul.f32 %v3278_v44, %v3937_v58 }
 0x14e   : > { %v627_v48 = vpop.f32.mrf.mxu0 }
 0x14f   : > { %1035 = vrot.lane.b32.xlu1 %v749_v14, %s3642_s24  ;;  %906 = vrot.lane.b32.xlu0 %v749_v14, %s3643_s28  ;;  %836 = vst.msk [vmem:[#allocation2 + $0x109] sm:$0x7f] %vm809_vm2, %v759_v45  ;;  %v757_v49 = vmax.f32 %v725_v46, 0.0  ;;  %v728_v50 = vadd.f32 %v3961_v61, %v689_v47  ;;  %v687_v52 = vmul.f32 %v3937_v58, %v627_v48  ;;  %v3540_v48 = vld [vmem:[%s4949_s2 + $0x68] sm:$0xff]  }
 0x150   : > { %v3281_v53 = vpop.f32.mrf.mxu0 }
 0x151   : > { %834 = vst.msk [vmem:[#allocation2 + $0xf9] sm:$0x7f] %vm809_vm2, %v757_v49  ;;  %v760_v54 = vmax.f32 %v728_v50, 0.0  ;;  %v726_v55 = vadd.f32 %v3961_v61, %v687_v52  ;;  %v692_v57 = vmul.f32 %v3281_v53, %v3937_v58  ;;  %v3541_v52 = vld [vmem:[%s4949_s2 + $0x60] sm:$0xff]  }
 0x152   : > { %v640_v59 = vpop.f32.mrf.mxu0 }
 0x153   : > { %912 = vrot.lane.b32.xlu0 %v4065_v18, %s3643_s28  ;;  %908 = vrot.lane.b32.xlu1 %v4073_v22, %s3643_s28  ;;  %837 = vst.msk [vmem:[#allocation2 + $0x111] sm:$0x7f] %vm809_vm2, %v760_v54  ;;  %v758_v60 = vmax.f32 %v726_v55, 0.0  ;;  %v731_v62 = vadd.f32 %v3961_v61, %v692_v57  ;;  %v690_v63 = vmul.f32 %v3937_v58, %v640_v59 }
 0x154   : > { %v3282_v0 = vpop.f32.mrf.mxu0 }
 0x155   : > { %835 = vst.msk [vmem:[#allocation2 + $0x101] sm:$0x7f] %vm809_vm2, %v758_v60  ;;  %v763_v1 = vmax.f32 %v731_v62, 0.0  ;;  %v729_v3 = vadd.f32 %v3961_v61, %v690_v63  ;;  %v693_v4 = vmul.f32 %v3282_v0, %v3937_v58 }
 0x156   : > { %v643_v5 = vpop.f32.mrf.mxu0 }
 0x157   : > { %1041 = vrot.lane.b32.xlu0 %v4065_v18, %s3642_s24  ;;  %918 = vrot.lane.b32.xlu1 %v755_v26, %s3643_s28  ;;  %840 = vst.msk [vmem:[#allocation2 + $0x129] sm:$0x7f] %vm809_vm2, %v763_v1  ;;  %v761_v6 = vmax.f32 %v729_v3, 0.0  ;;  %v732_v7 = vadd.f32 %v3961_v61, %v693_v4  ;;  %v691_v8 = vmul.f32 %v3937_v58, %v643_v5  ;;  %v4152_v58 = vld [vmem:[%s4949_s2 + $0x88] sm:$0xff]   ;;  %v3531_v3 = vld [vmem:[%s4949_s2 + $0x50] sm:$0xff]  }
 0x158   : > { %3371 = vmatprep.subr.bf16.mxu0 %v4152_v58 }
 0x159   : > { %838 = vst.msk [vmem:[#allocation2 + $0x119] sm:$0x7f] %vm809_vm2, %v761_v6  ;;  %v764_v9 = vmax.f32 %v732_v7, 0.0  ;;  %v730_v10 = vadd.f32 %v3961_v61, %v691_v8  ;;  %v3532_v7 = vld [vmem:[%s4949_s2 + $0x48] sm:$0xff]   ;;  %v1181_v8 = vld [vmem:[#allocation2 + $0xa0] sm:$0xff] }
 0x15b   : > { %1037 = vrot.lane.b32.xlu0 %v4073_v22, %s3642_s24  ;;  %1047 = vrot.lane.b32.xlu1 %v755_v26, %s3642_s24  ;;  %841 = vst.msk [vmem:[#allocation2 + $0x131] sm:$0x7f] %vm809_vm2, %v764_v9  ;;  %v762_v11 = vmax.f32 %v730_v10, 0.0 }
 0x15d   : > { %839 = vst.msk [vmem:[#allocation2 + $0x121] sm:$0x7f] %vm809_vm2, %v762_v11 }
 0x15f   : > { %914 = vrot.lane.b32.xlu1 %v753_v30, %s3643_s28  ;;  %916 = vrot.lane.b32.xlu0 %v754_v40, %s3643_s28 }
 0x163   : > { %1043 = vrot.lane.b32.xlu1 %v753_v30, %s3642_s24  ;;  %1045 = vrot.lane.b32.xlu0 %v754_v40, %s3642_s24 }
 0x167   : > { %926 = vrot.lane.b32.xlu0 %v759_v45, %s3643_s28  ;;  %1051 = vrot.lane.b32.xlu1 %v757_v49, %s3642_s24 }
 0x16b   : > { %1055 = vrot.lane.b32.xlu0 %v759_v45, %s3642_s24  ;;  %924 = vrot.lane.b32.xlu1 %v758_v60, %s3643_s28  ;;  %v3539_v45 = vld [vmem:[%s4949_s2 + $0x70] sm:$0xff]  }
 0x16f   : > { %922 = vrot.lane.b32.xlu0 %v757_v49, %s3643_s28  ;;  %1053 = vrot.lane.b32.xlu1 %v758_v60, %s3642_s24 }
 0x173   : > { %928 = vrot.lane.b32.xlu0 %v760_v54, %s3643_s28  ;;  %934 = vrot.lane.b32.xlu1 %v763_v1, %s3643_s28 }
 0x177   : > { %1057 = vrot.lane.b32.xlu0 %v760_v54, %s3642_s24  ;;  %1063 = vrot.lane.b32.xlu1 %v763_v1, %s3642_s24 }
 0x17b   : > { %930 = vrot.lane.b32.xlu1 %v761_v6, %s3643_s28  ;;  %932 = vrot.lane.b32.xlu0 %v762_v11, %s3643_s28 }
 0x17f   : > { %1059 = vrot.lane.b32.xlu1 %v761_v6, %s3642_s24  ;;  %1061 = vrot.lane.b32.xlu0 %v762_v11, %s3642_s24 }
 0x183   : > { %892 = vrot.lane.b32.xlu1 %v4030_v51, %s3643_s28  ;;  %890 = vrot.lane.b32.xlu0 %v4019_v43, %s3643_s28 }
 0x187   : > { %1019 = vrot.lane.b32.xlu1 %v4019_v43, %s3642_s24  ;;  %894 = vrot.lane.b32.xlu0 %v4013_v39, %s3643_s28 }
 0x18b   : > { %1023 = vrot.lane.b32.xlu1 %v4013_v39, %s3642_s24  ;;  %1021 = vrot.lane.b32.xlu0 %v4030_v51, %s3642_s24 }
 0x18f   : > { %1017 = vrot.lane.b32.xlu1 %v4002_v31, %s3642_s24  ;;  %888 = vrot.lane.b32.xlu0 %v4002_v31, %s3643_s28 }
 0x191   : > { %v1008_v61 = vpop.permute.xlu1 %1007  ;;  %v879_v43 = vpop.permute.xlu0 %878 }
 0x192   : > { %973 = vst.msk [vmem:[#allocation2 + $0x18] sm:$0xff] %vm970_vm3, %v879_v43 }
 0x193   : > { %1102 = vst.msk [vmem:[#allocation2 + $0x17] sm:$0xfe] %vm1099_vm4, %v1008_v61  ;;  %1033 = vrot.lane.b32.xlu1 %v4046_v2, %s3642_s24  ;;  %904 = vrot.lane.b32.xlu0 %v4046_v2, %s3643_s28  ;;  %v1165_v2 = vld [vmem:[#allocation2] sm:$0xff] }
 0x194   : > { %1135 = vst.msk [vmem:[#allocation2 + $0x1f] sm:$0x1] %vm1132_vm5, %v3641_v56 }
 0x195   : > { %v1004_v39 = vpop.permute.xlu1 %1003  ;;  %v875_v31 = vpop.permute.xlu0 %874 }
 0x196   : > { %971 = vst.msk [vmem:[#allocation2 + $0x8] sm:$0xff] %vm970_vm3, %v875_v31 }
 0x197   : > { %1100 = vst.msk [vmem:[#allocation2 + $0x7] sm:$0xfe] %vm1099_vm4, %v1004_v39  ;;  %1049 = vrot.lane.b32.xlu1 %v4087_v35, %s3642_s24  ;;  %920 = vrot.lane.b32.xlu0 %v4087_v35, %s3643_s28  ;;  %v3535_v39 = vld [vmem:[%s4949_s2 + $0x38] sm:$0xff]  }
 0x198   : > { %1133 = vst.msk [vmem:[#allocation2 + $0xf] sm:$0x1] %vm1132_vm5, %v3641_v56 }
 0x199   : > { %v881_v51 = vpop.permute.xlu0 %880  ;;  %v877_v13 = vpop.permute.xlu1 %876 }
 0x19a   : > { %974 = vst.msk [vmem:[#allocation2 + $0x20] sm:$0xff] %vm970_vm3, %v881_v51  ;;  %972 = vst.msk [vmem:[#allocation2 + $0x10] sm:$0xff] %vm970_vm3, %v877_v13 }
 0x19b   : > { %1136 = vst.msk [vmem:[#allocation2 + $0x27] sm:$0x1] %vm1132_vm5, %v3641_v56  ;;  %1134 = vst.msk [vmem:[#allocation2 + $0x17] sm:$0x1] %vm1132_vm5, %v3641_v56  ;;  %1065 = vrot.lane.b32.xlu1 %v764_v9, %s3642_s24  ;;  %936 = vrot.lane.b32.xlu0 %v764_v9, %s3643_s28  ;;  %v4211_v22 = vld [vmem:[#allocation2 + $0x18] sm:$0xff] }
 0x19d   : > { %v1010_v14 = vpop.permute.xlu0 %1009  ;;  %v887_v15 = vpop.permute.xlu1 %886 }
 0x19e   : > { %1103 = vst.msk [vmem:[#allocation2 + $0x1f] sm:$0xfe] %vm1099_vm4, %v1010_v14 }
 0x19f   : > { %977 = vst.msk [vmem:[#allocation2 + $0x38] sm:$0xff] %vm970_vm3, %v887_v15  ;;  %v4203_v16 = vld [vmem:[#allocation2 + $0x8] sm:$0xff]  ;;  %v3537_v15 = vld [vmem:[%s4949_s2 + $0x30] sm:$0xff]  }
 0x1a0   : > { %1139 = vst.msk [vmem:[#allocation2 + $0x3f] sm:$0x1] %vm1132_vm5, %v3641_v56  ;;  %v1197_v17 = vpack.c.bf16 %v4203_v16, %v1165_v2 }
 0x1a1   : > { %v1006_v18 = vpop.permute.xlu0 %1005  ;;  %v1016_v19 = vpop.permute.xlu1 %1015 }
 0x1a2   : > { %3295 = vmatprep.mubr.msk.bf16.mxu0 %vm765_vm1, %v1197_v17  ;;  %1101 = vst.msk [vmem:[#allocation2 + $0xf] sm:$0xfe] %vm1099_vm4, %v1006_v18  ;;  %1106 = vst.msk [vmem:[#allocation2 + $0x37] sm:$0xfe] %vm1099_vm4, %v1016_v19 }
 0x1a5   : > { %v883_v20 = vpop.permute.xlu1 %882  ;;  %v885_v21 = vpop.permute.xlu0 %884  ;;  %v4213_v23 = vld [vmem:[#allocation2 + $0x20] sm:$0xff] }
 0x1a6   : > { %975 = vst.msk [vmem:[#allocation2 + $0x28] sm:$0xff] %vm970_vm3, %v883_v20  ;;  %976 = vst.msk [vmem:[#allocation2 + $0x30] sm:$0xff] %vm970_vm3, %v885_v21  ;;  %v1536_v24 = vpack.c.bf16 %v4213_v23, %v4211_v22 }
 0x1a7   : > { %1137 = vst.msk [vmem:[#allocation2 + $0x2f] sm:$0x1] %vm1132_vm5, %v3641_v56  ;;  %1138 = vst.msk [vmem:[#allocation2 + $0x37] sm:$0x1] %vm1132_vm5, %v3641_v56 }
 0x1a9   : > { %v1012_v25 = vpop.permute.xlu1 %1011  ;;  %v1014_v26 = vpop.permute.xlu0 %1013  ;;  %v4223_v27 = vld [vmem:[#allocation2 + $0x10] sm:$0xff]  ;;  %v4252_v40 = vld [vmem:[#allocation2 + $0x38] sm:$0xff] }
 0x1aa   : > { %1104 = vst.msk [vmem:[#allocation2 + $0x27] sm:$0xfe] %vm1099_vm4, %v1012_v25  ;;  %1105 = vst.msk [vmem:[#allocation2 + $0x2f] sm:$0xfe] %vm1099_vm4, %v1014_v26  ;;  %v4229_v28 = vpack.c.bf16 %v4211_v22, %v4223_v27  ;;  %v1535_v30 = vpack.c.bf16 %v4223_v27, %v4203_v16 }
 0x1ac   : > { %3296 = vmatmul.mubr.msk.bf16.vlgmr.msra.gmra.mxu0 %vm765_vm1, %v4229_v28 }
 0x1ad   : > { %v897_v32 = vpop.permute.xlu0 %896  ;;  %v903_v33 = vpop.permute.xlu1 %902  ;;  %3372 = vmatpush3.bf16.msra.mxu0 %v4152_v58  ;;  %v3533_v58 = vld [vmem:[%s4949_s2 + $0x40] sm:$0xff]  }
 0x1ae   : > { %982 = vst.msk [vmem:[#allocation2 + $0x70] sm:$0xff] %vm970_vm3, %v897_v32  ;;  %985 = vst.msk [vmem:[#allocation2 + $0x88] sm:$0xff] %vm970_vm3, %v903_v33  ;;  %3373 = vmatprep.subr.bf16.mxu0 %v3536_v29 }
 0x1af   : > { %1144 = vst.msk [vmem:[#allocation2 + $0x77] sm:$0x1] %vm1132_vm5, %v3641_v56  ;;  %1147 = vst.msk [vmem:[#allocation2 + $0x8f] sm:$0x1] %vm1132_vm5, %v3641_v56 }
 0x1b1   : > { %v1026_v35 = vpop.permute.xlu0 %1025  ;;  %v1032_v36 = vpop.permute.xlu1 %1031  ;;  %v4248_v37 = vld [vmem:[#allocation2 + $0x28] sm:$0xff]  ;;  %v4250_v38 = vld [vmem:[#allocation2 + $0x30] sm:$0xff]  ;;  %3374 = vmatpush3.bf16.msra.mxu0 %v3536_v29 }
 0x1b2   : > { %1111 = vst.msk [vmem:[#allocation2 + $0x6f] sm:$0xfe] %vm1099_vm4, %v1026_v35  ;;  %1114 = vst.msk [vmem:[#allocation2 + $0x87] sm:$0xfe] %vm1099_vm4, %v1032_v36  ;;  %v4258_v41 = vpack.c.bf16 %v4248_v37, %v4213_v23  ;;  %v4262_v42 = vpack.c.bf16 %v4252_v40, %v4250_v38  ;;  %3375 = vmatprep.subr.bf16.mxu0 %v3538_v34  ;;  %v1537_v44 = vpack.c.bf16 %v4250_v38, %v4248_v37 }
 0x1b4   : > { %3299 = vmatprep.mubr.msk.bf16.mxu0 %vm765_vm1, %v4258_v41 }
 0x1b5   : > { %3300 = vmatmul.mubr.msk.bf16.gmra.mxu0 %vm765_vm1, %v4262_v42  ;;  %v1028_v46 = vpop.permute.xlu1 %1027  ;;  %v899_v47 = vpop.permute.xlu0 %898 }
 0x1b6   : > { %983 = vst.msk [vmem:[#allocation2 + $0x78] sm:$0xff] %vm970_vm3, %v899_v47  ;;  %3376 = vmatpush3.bf16.msra.mxu0 %v3538_v34 }
 0x1b7   : > { %1112 = vst.msk [vmem:[#allocation2 + $0x77] sm:$0xfe] %vm1099_vm4, %v1028_v46  ;;  %3377 = vmatprep.subr.bf16.mxu0 %v3539_v45 }
 0x1b8   : > { %1145 = vst.msk [vmem:[#allocation2 + $0x7f] sm:$0x1] %vm1132_vm5, %v3641_v56 }
 0x1b9   : > { %v1030_v49 = vpop.permute.xlu0 %1029  ;;  %v901_v50 = vpop.permute.xlu1 %900  ;;  %v4288_v55 = vld [vmem:[#allocation2 + $0x70] sm:$0xff]  ;;  %v4304_v0 = vld [vmem:[#allocation2 + $0x88] sm:$0xff] }
 0x1ba   : > { %984 = vst.msk [vmem:[#allocation2 + $0x80] sm:$0xff] %vm970_vm3, %v901_v50  ;;  %3378 = vmatpush3.bf16.msra.mxu0 %v3539_v45 }
 0x1bb   : > { %1113 = vst.msk [vmem:[#allocation2 + $0x7f] sm:$0xfe] %vm1099_vm4, %v1030_v49  ;;  %3379 = vmatprep.subr.bf16.mxu0 %v3540_v48 }
 0x1bc   : > { %1146 = vst.msk [vmem:[#allocation2 + $0x87] sm:$0x1] %vm1132_vm5, %v3641_v56 }
 0x1bd   : > { %v1040_v53 = vpop.permute.xlu1 %1039  ;;  %v911_v54 = vpop.permute.xlu0 %910 }
 0x1be   : > { %989 = vst.msk [vmem:[#allocation2 + $0xb8] sm:$0xff] %vm970_vm3, %v911_v54  ;;  %3380 = vmatpush3.bf16.msra.mxu0 %v3540_v48 }
 0x1bf   : > { %v4290_v57 = vld [vmem:[#allocation2 + $0x78] sm:$0xff]  ;;  %1118 = vst.msk [vmem:[#allocation2 + $0xb7] sm:$0xfe] %vm1099_vm4, %v1040_v53  ;;  %3381 = vmatprep.subr.bf16.mxu0 %v3541_v52 }
 0x1c0   : > { %1151 = vst.msk [vmem:[#allocation2 + $0xbf] sm:$0x1] %vm1132_vm5, %v3641_v56  ;;  %v4297_v59 = vpack.c.bf16 %v4290_v57, %v4288_v55 }
 0x1c1   : > { %v1036_v60 = vpop.permute.xlu1 %1035  ;;  %v907_v62 = vpop.permute.xlu0 %906 }
 0x1c2   : > { %3307 = vmatprep.mubr.msk.bf16.mxu1 %vm765_vm1, %v4297_v59  ;;  %987 = vst.msk [vmem:[#allocation2 + $0xa8] sm:$0xff] %vm970_vm3, %v907_v62  ;;  %3382 = vmatpush3.bf16.msra.mxu0 %v3541_v52  ;;  %v1189_v52 = vld [vmem:[#allocation2 + $0xf0] sm:$0xff] }
 0x1c3   : > { %v4302_v63 = vld [vmem:[#allocation2 + $0x80] sm:$0xff]  ;;  %1116 = vst.msk [vmem:[#allocation2 + $0xa7] sm:$0xfe] %vm1099_vm4, %v1036_v60 }
 0x1c4   : > { %1149 = vst.msk [vmem:[#allocation2 + $0xaf] sm:$0x1] %vm1132_vm5, %v3641_v56  ;;  %v4311_v1 = vpack.c.bf16 %v4304_v0, %v4302_v63  ;;  %v1541_v4 = vpack.c.bf16 %v4302_v63, %v4290_v57 }
 0x1c5   : > { %v913_v5 = vpop.permute.xlu0 %912  ;;  %v909_v6 = vpop.permute.xlu1 %908 }
 0x1c6   : > { %3308 = vmatmul.mubr.msk.bf16.vlgmr.msra.gmra.mxu1 %vm765_vm1, %v4311_v1  ;;  %990 = vst.msk [vmem:[#allocation2 + $0xc0] sm:$0xff] %vm970_vm3, %v913_v5  ;;  %988 = vst.msk [vmem:[#allocation2 + $0xb0] sm:$0xff] %vm970_vm3, %v909_v6 }
 0x1c7   : > { %3328 = vmatpush3.bf16.msra.mxu1 %v4133_v12  ;;  %1152 = vst.msk [vmem:[#allocation2 + $0xc7] sm:$0x1] %vm1132_vm5, %v3641_v56  ;;  %1150 = vst.msk [vmem:[#allocation2 + $0xb7] sm:$0x1] %vm1132_vm5, %v3641_v56  ;;  %v4346_v13 = vld [vmem:[#allocation2 + $0xb8] sm:$0xff] }
 0x1c8   : > { %3329 = vmatprep.subr.bf16.mxu1 %v3531_v3 }
 0x1c9   : > { %v1042_v9 = vpop.permute.xlu0 %1041  ;;  %v919_v10 = vpop.permute.xlu1 %918 }
 0x1ca   : > { %1119 = vst.msk [vmem:[#allocation2 + $0xbf] sm:$0xfe] %vm1099_vm4, %v1042_v9 }
 0x1cb   : > { %993 = vst.msk [vmem:[#allocation2 + $0xd8] sm:$0xff] %vm970_vm3, %v919_v10  ;;  %v4332_v11 = vld [vmem:[#allocation2 + $0xa8] sm:$0xff]  ;;  %3330 = vmatpush3.bf16.msra.mxu1 %v3531_v3 }
 0x1cc   : > { %1155 = vst.msk [vmem:[#allocation2 + $0xdf] sm:$0x1] %vm1132_vm5, %v3641_v56  ;;  %v1205_v12 = vpack.c.bf16 %v4332_v11, %v1181_v8  ;;  %3331 = vmatprep.subr.bf16.mxu1 %v3532_v7 }
 0x1cd   : > { %v1038_v61 = vpop.permute.xlu0 %1037  ;;  %v1048_v43 = vpop.permute.xlu1 %1047 }
 0x1ce   : > { %3311 = vmatprep.mubr.msk.bf16.mxu1 %vm765_vm1, %v1205_v12  ;;  %1117 = vst.msk [vmem:[#allocation2 + $0xaf] sm:$0xfe] %vm1099_vm4, %v1038_v61  ;;  %1122 = vst.msk [vmem:[#allocation2 + $0xd7] sm:$0xfe] %vm1099_vm4, %v1048_v43 }
 0x1cf   : > { %3332 = vmatpush3.bf16.msra.mxu1 %v3532_v7 }
 0x1d0   : > { %3333 = vmatprep.subr.bf16.mxu1 %v3533_v58 }
 0x1d1   : > { %v915_v31 = vpop.permute.xlu1 %914  ;;  %v917_v51 = vpop.permute.xlu0 %916  ;;  %v4348_v2 = vld [vmem:[#allocation2 + $0xc0] sm:$0xff] }
 0x1d2   : > { %991 = vst.msk [vmem:[#allocation2 + $0xc8] sm:$0xff] %vm970_vm3, %v915_v31  ;;  %992 = vst.msk [vmem:[#allocation2 + $0xd0] sm:$0xff] %vm970_vm3, %v917_v51  ;;  %v1544_v14 = vpack.c.bf16 %v4348_v2, %v4346_v13 }
 0x1d3   : > { %3334 = vmatpush3.bf16.msra.mxu1 %v3533_v58  ;;  %1153 = vst.msk [vmem:[#allocation2 + $0xcf] sm:$0x1] %vm1132_vm5, %v3641_v56  ;;  %1154 = vst.msk [vmem:[#allocation2 + $0xd7] sm:$0x1] %vm1132_vm5, %v3641_v56 }
 0x1d4   : > { %3335 = vmatprep.subr.bf16.mxu1 %v3535_v39 }
 0x1d5   : > { %v1044_v17 = vpop.permute.xlu1 %1043  ;;  %v1046_v18 = vpop.permute.xlu0 %1045  ;;  %v4361_v19 = vld [vmem:[#allocation2 + $0xb0] sm:$0xff]  ;;  %v4380_v35 = vld [vmem:[#allocation2 + $0xd8] sm:$0xff] }
 0x1d6   : > { %1120 = vst.msk [vmem:[#allocation2 + $0xc7] sm:$0xfe] %vm1099_vm4, %v1044_v17  ;;  %1121 = vst.msk [vmem:[#allocation2 + $0xcf] sm:$0xfe] %vm1099_vm4, %v1046_v18  ;;  %v4367_v20 = vpack.c.bf16 %v4346_v13, %v4361_v19  ;;  %v1543_v21 = vpack.c.bf16 %v4361_v19, %v4332_v11 }
 0x1d7   : > { %3336 = vmatpush3.bf16.msra.mxu1 %v3535_v39 }
 0x1d8   : > { %3337 = vmatprep.subr.bf16.mxu1 %v3537_v15  ;;  %3312 = vmatmul.mubr.msk.bf16.gmra.mxu1 %vm765_vm1, %v4367_v20 }
 0x1d9   : > { %v927_v25 = vpop.permute.xlu0 %926  ;;  %v1052_v26 = vpop.permute.xlu1 %1051 }
 0x1da   : > { %997 = vst.msk [vmem:[#allocation2 + $0x108] sm:$0xff] %vm970_vm3, %v927_v25 }
 0x1db   : > { %3338 = vmatpush3.bf16.msra.mxu1 %v3537_v15  ;;  %1159 = vst.msk [vmem:[#allocation2 + $0x10f] sm:$0x1] %vm1132_vm5, %v3641_v56 }
 0x1dd   : > { %v1056_v29 = vpop.permute.xlu0 %1055  ;;  %v925_v32 = vpop.permute.xlu1 %924  ;;  %v4376_v33 = vld [vmem:[#allocation2 + $0xc8] sm:$0xff]  ;;  %v4378_v34 = vld [vmem:[#allocation2 + $0xd0] sm:$0xff] }
 0x1de   : > { %1126 = vst.msk [vmem:[#allocation2 + $0x107] sm:$0xfe] %vm1099_vm4, %v1056_v29  ;;  %v4386_v36 = vpack.c.bf16 %v4376_v33, %v4348_v2  ;;  %v4390_v45 = vpack.c.bf16 %v4380_v35, %v4378_v34  ;;  %v1545_v46 = vpack.c.bf16 %v4378_v34, %v4376_v33 }
 0x1df   : > { %996 = vst.msk [vmem:[#allocation2 + $0x100] sm:$0xff] %vm970_vm3, %v925_v32  ;;  %v1173_v32 = vld [vmem:[#allocation2 + $0x50] sm:$0xff] }
 0x1e0   : > { %1158 = vst.msk [vmem:[#allocation2 + $0x107] sm:$0x1] %vm1132_vm5, %v3641_v56  ;;  %3315 = vmatprep.mubr.msk.bf16.mxu1 %vm765_vm1, %v4386_v36 }
 0x1e1   : > { %3316 = vmatmul.mubr.msk.bf16.gmra.mxu1 %vm765_vm1, %v4390_v45  ;;  %v923_v47 = vpop.permute.xlu0 %922  ;;  %v1054_v48 = vpop.permute.xlu1 %1053 }
 0x1e2   : > { %995 = vst.msk [vmem:[#allocation2 + $0xf8] sm:$0xff] %vm970_vm3, %v923_v47 }
 0x1e3   : > { %1125 = vst.msk [vmem:[#allocation2 + $0xff] sm:$0xfe] %vm1099_vm4, %v1054_v48  ;;  %1124 = vst.msk [vmem:[#allocation2 + $0xf7] sm:$0xfe] %vm1099_vm4, %v1052_v26 }
 0x1e4   : > { %1157 = vst.msk [vmem:[#allocation2 + $0xff] sm:$0x1] %vm1132_vm5, %v3641_v56 }
 0x1e5   : > { %v929_v49 = vpop.permute.xlu0 %928  ;;  %v935_v50 = vpop.permute.xlu1 %934  ;;  %v4418_v5 = vld [vmem:[#allocation2 + $0x108] sm:$0xff] }
 0x1e6   : > { %998 = vst.msk [vmem:[#allocation2 + $0x110] sm:$0xff] %vm970_vm3, %v929_v49  ;;  %1001 = vst.msk [vmem:[#allocation2 + $0x128] sm:$0xff] %vm970_vm3, %v935_v50 }
 0x1e7   : > { %1160 = vst.msk [vmem:[#allocation2 + $0x117] sm:$0x1] %vm1132_vm5, %v3641_v56  ;;  %1163 = vst.msk [vmem:[#allocation2 + $0x12f] sm:$0x1] %vm1132_vm5, %v3641_v56 }
 0x1e9   : > { %v1058_v53 = vpop.permute.xlu0 %1057  ;;  %v1064_v54 = vpop.permute.xlu1 %1063 }
 0x1ea   : > { %v4411_v60 = vld [vmem:[#allocation2 + $0x100] sm:$0xff]  ;;  %1127 = vst.msk [vmem:[#allocation2 + $0x10f] sm:$0xfe] %vm1099_vm4, %v1058_v53  ;;  %1130 = vst.msk [vmem:[#allocation2 + $0x127] sm:$0xfe] %vm1099_vm4, %v1064_v54 }
 0x1eb   : > { %v4415_v62 = vld [vmem:[#allocation2 + $0xf8] sm:$0xff]  ;;  %v4424_v7 = vpack.c.bf16 %v4418_v5, %v4411_v60 }
 0x1ec   : > { %v1209_v3 = vpack.c.bf16 %v4415_v62, %v1189_v52  ;;  %v1547_v6 = vpack.c.bf16 %v4411_v60, %v4415_v62 }
 0x1ed   : > { %v931_v8 = vpop.permute.xlu1 %930  ;;  %v933_v9 = vpop.permute.xlu0 %932 }
 0x1ee   : > { %3319 = vmatprep.mubr.msk.bf16.mxu1 %vm765_vm1, %v1209_v3  ;;  %999 = vst.msk [vmem:[#allocation2 + $0x118] sm:$0xff] %vm970_vm3, %v931_v8  ;;  %1000 = vst.msk [vmem:[#allocation2 + $0x120] sm:$0xff] %vm970_vm3, %v933_v9 }
 0x1ef   : > { %3320 = vmatmul.mubr.msk.bf16.gmra.mxu1 %vm765_vm1, %v4424_v7  ;;  %1161 = vst.msk [vmem:[#allocation2 + $0x11f] sm:$0x1] %vm1132_vm5, %v3641_v56  ;;  %1162 = vst.msk [vmem:[#allocation2 + $0x127] sm:$0x1] %vm1132_vm5, %v3641_v56 }
 0x1f1   : > { %v1060_v10 = vpop.permute.xlu1 %1059  ;;  %v1062_v12 = vpop.permute.xlu0 %1061  ;;  %v4443_v43 = vld [vmem:[#allocation2 + $0x110] sm:$0xff]  ;;  %v4449_v17 = vld [vmem:[#allocation2 + $0x128] sm:$0xff] }
 0x1f2   : > { %1128 = vst.msk [vmem:[#allocation2 + $0x117] sm:$0xfe] %vm1099_vm4, %v1060_v10  ;;  %1129 = vst.msk [vmem:[#allocation2 + $0x11f] sm:$0xfe] %vm1099_vm4, %v1062_v12 }
 0x1f5   : > { %v893_v58 = vpop.permute.xlu1 %892  ;;  %v891_v61 = vpop.permute.xlu0 %890 }
 0x1f6   : > { %980 = vst.msk [vmem:[#allocation2 + $0x60] sm:$0xff] %vm970_vm3, %v893_v58  ;;  %979 = vst.msk [vmem:[#allocation2 + $0x58] sm:$0xff] %vm970_vm3, %v891_v61 }
 0x1f7   : > { %1142 = vst.msk [vmem:[#allocation2 + $0x67] sm:$0x1] %vm1132_vm5, %v3641_v56  ;;  %1141 = vst.msk [vmem:[#allocation2 + $0x5f] sm:$0x1] %vm1132_vm5, %v3641_v56 }
 0x1f9   : > { %v1020_v39 = vpop.permute.xlu1 %1019  ;;  %v895_v31 = vpop.permute.xlu0 %894  ;;  %v4445_v51 = vld [vmem:[#allocation2 + $0x118] sm:$0xff]  ;;  %v4447_v15 = vld [vmem:[#allocation2 + $0x120] sm:$0xff] }
 0x1fa   : > { %1108 = vst.msk [vmem:[#allocation2 + $0x57] sm:$0xfe] %vm1099_vm4, %v1020_v39  ;;  %v4455_v18 = vpack.c.bf16 %v4445_v51, %v4443_v43  ;;  %v4459_v25 = vpack.c.bf16 %v4449_v17, %v4447_v15 }
 0x1fb   : > { %981 = vst.msk [vmem:[#allocation2 + $0x68] sm:$0xff] %vm970_vm3, %v895_v31 }
 0x1fc   : > { %1143 = vst.msk [vmem:[#allocation2 + $0x6f] sm:$0x1] %vm1132_vm5, %v3641_v56  ;;  %3323 = vmatprep.mubr.msk.bf16.mxu1 %vm765_vm1, %v4455_v18 }
 0x1fd   : > { %v1024_v26 = vpop.permute.xlu1 %1023  ;;  %v1022_v29 = vpop.permute.xlu0 %1021  ;;  %3324 = vmatmul.mubr.msk.bf16.gmra.mxu1 %vm765_vm1, %v4459_v25 }
 0x1fe   : > { %1110 = vst.msk [vmem:[#allocation2 + $0x67] sm:$0xfe] %vm1099_vm4, %v1024_v26  ;;  %1109 = vst.msk [vmem:[#allocation2 + $0x5f] sm:$0xfe] %vm1099_vm4, %v1022_v29  ;;  %3339 = vmatprep.mubr.msk.bf16.mxu1 %vm765_vm1, %v1535_v30 }
 0x201   : > { %v1018_v47 = vpop.permute.xlu1 %1017  ;;  %v889_v48 = vpop.permute.xlu0 %888  ;;  %v1174_v49 = vld [vmem:[#allocation2 + $0x58] sm:$0xff] }
 0x202   : > { %978 = vst.msk [vmem:[#allocation2 + $0x40] sm:$0xff] %vm970_vm3, %v889_v48  ;;  %v1201_v50 = vpack.c.bf16 %v1174_v49, %v1173_v32 }
 0x203   : > { %1107 = vst.msk [vmem:[#allocation2 + $0x3f] sm:$0xfe] %vm1099_vm4, %v1018_v47 }
 0x204   : > { %1140 = vst.msk [vmem:[#allocation2 + $0x47] sm:$0x1] %vm1132_vm5, %v3641_v56  ;;  %3303 = vmatprep.mubr.msk.bf16.mxu0 %vm765_vm1, %v1201_v50 }
 0x205   : > { %v1034_v52 = vpop.permute.xlu1 %1033  ;;  %v905_v53 = vpop.permute.xlu0 %904  ;;  %3340 = vmatmul.mubr.msk.bf16.vlgmr.msra.gmra.mxu1 %vm765_vm1, %v1536_v24  ;;  %v1175_v16 = vld [vmem:[#allocation2 + $0x60] sm:$0xff]  ;;  %v1176_v27 = vld [vmem:[#allocation2 + $0x68] sm:$0xff] }
 0x206   : > { %986 = vst.msk [vmem:[#allocation2 + $0x90] sm:$0xff] %vm970_vm3, %v905_v53  ;;  %3343 = vmatprep.mubr.msk.bf16.mxu1 %vm765_vm1, %v1537_v44  ;;  %v1202_v30 = vpack.c.bf16 %v1176_v27, %v1175_v16  ;;  %v1539_v38 = vpack.c.bf16 %v1175_v16, %v1174_v49 }
 0x207   : > { %1115 = vst.msk [vmem:[#allocation2 + $0x8f] sm:$0xfe] %vm1099_vm4, %v1034_v52 }
 0x208   : > { %1148 = vst.msk [vmem:[#allocation2 + $0x97] sm:$0x1] %vm1132_vm5, %v3641_v56  ;;  %3304 = vmatmul.mubr.msk.bf16.gmra.mxu0 %vm765_vm1, %v1202_v30 }
 0x209   : > { %v1050_v22 = vpop.permute.xlu1 %1049  ;;  %3383 = vmatprep.mubr.msk.bf16.mxu0 %vm765_vm1, %v4229_v28  ;;  %v921_v23 = vpop.permute.xlu0 %920  ;;  %v1540_v28 = vpack.c.bf16 %v4288_v55, %v1176_v27 }
 0x20a   : > { %994 = vst.msk [vmem:[#allocation2 + $0xe0] sm:$0xff] %vm970_vm3, %v921_v23 }
 0x20b   : > { %v1510_v24 = vld [vmem:[#allocation2 + $0x40] sm:$0xff]  ;;  %1123 = vst.msk [vmem:[#allocation2 + $0xdf] sm:$0xfe] %vm1099_vm4, %v1050_v22 }
 0x20c   : > { %1156 = vst.msk [vmem:[#allocation2 + $0xe7] sm:$0x1] %vm1132_vm5, %v3641_v56  ;;  %v1538_v37 = vpack.c.bf16 %v1510_v24, %v4252_v40  ;;  %v1913_v40 = vld [vmem:[#allocation2 + $0x48] sm:$0xff] }
 0x20d   : > { %v1066_v44 = vpop.permute.xlu1 %1065  ;;  %v937_v54 = vpop.permute.xlu0 %936  ;;  %v1941_v3 = vpack.c.bf16 %v1913_v40, %v1510_v24 }
 0x20e   : > { %3344 = vmatmul.mubr.msk.bf16.gmra.mxu1 %vm765_vm1, %v1538_v37  ;;  %1002 = vst.msk [vmem:[#allocation2 + $0x130] sm:$0xff] %vm970_vm3, %v937_v54 }
 0x20f   : > { %3347 = vmatprep.mubr.msk.bf16.mxu1 %vm765_vm1, %v1539_v38  ;;  %1131 = vst.msk [vmem:[#allocation2 + $0x12f] sm:$0xfe] %vm1099_vm4, %v1066_v44 }
 0x210   : > { %1164 = vst.msk [vmem:[#allocation2 + $0x137] sm:$0x1] %vm1132_vm5, %v3641_v56  ;;  %3384 = vmatmul.mubr.msk.bf16.vlgmr.msra.gmra.mxu0 %vm765_vm1, %v4258_v41  ;;  %v1518_v56 = vld [vmem:[#allocation2 + $0x90] sm:$0xff] }
 0x211   : > { %3387 = vmatprep.mubr.msk.bf16.mxu0 %vm765_vm1, %v4262_v42  ;;  %v1542_v41 = vpack.c.bf16 %v1518_v56, %v4304_v0  ;;  %v1921_v42 = vld [vmem:[#allocation2 + $0x98] sm:$0xff]  ;;  %v1548_v0 = vpack.c.bf16 %v4443_v43, %v4418_v5 }
 0x212   : > { %v1945_v55 = vpack.c.bf16 %v1921_v42, %v1518_v56 }
 0x213   : > { %v1526_v57 = vld [vmem:[#allocation2 + $0xe0] sm:$0xff] }
 0x214   : > { %v1546_v63 = vpack.c.bf16 %v1526_v57, %v4380_v35 }
 0x216   : > { %3348 = vmatmul.mubr.msk.bf16.gmra.mxu1 %vm765_vm1, %v1540_v28 }
 0x217   : > { %3351 = vmatprep.mubr.msk.bf16.mxu1 %vm765_vm1, %v1541_v4  ;;  %v1549_v4 = vpack.c.bf16 %v4447_v15, %v4445_v51  ;;  %v1534_v13 = vld [vmem:[#allocation2 + $0x130] sm:$0xff] }
 0x218   : > { %3388 = vmatmul.mubr.msk.bf16.gmra.mxu0 %vm765_vm1, %v1941_v3  ;;  %v1550_v2 = vpack.c.bf16 %v1534_v13, %v4449_v17 }
 0x219   : > { %3391 = vmatprep.mubr.msk.bf16.mxu0 %vm765_vm1, %v1202_v30 }
 0x21e   : > { %3352 = vmatmul.mubr.msk.bf16.gmra.mxu1 %vm765_vm1, %v1542_v41 }
 0x21f   : > { %3355 = vmatprep.mubr.msk.bf16.mxu1 %vm765_vm1, %v1543_v21 }
 0x220   : > { %3392 = vmatmul.mubr.msk.bf16.gmra.mxu0 %vm765_vm1, %v4297_v59  ;;  %v3542_v59 = vld [vmem:[%s4950_s3 + $0x8] sm:$0xff]  }
 0x221   : > { %3395 = vmatprep.mubr.msk.bf16.mxu0 %vm765_vm1, %v4311_v1  ;;  %3415 = vmatprep.subr.bf16.mxu1 %v3542_v59  ;;  %v1929_v1 = vld [vmem:[#allocation2 + $0xe8] sm:$0xff] }
 0x222   : > { %3416 = vmatpush3.bf16.msra.mxu1 %v3542_v59  ;;  %v1949_v11 = vpack.c.bf16 %v1929_v1, %v1526_v57 }
 0x226   : > { %3356 = vmatmul.mubr.msk.bf16.gmra.mxu1 %vm765_vm1, %v1544_v14  ;;  %v1937_v14 = vld [vmem:[#allocation2 + $0x138] sm:$0xff] }
 0x227   : > { %3359 = vmatprep.mubr.msk.bf16.mxu1 %vm765_vm1, %v1545_v46  ;;  %v1953_v19 = vpack.c.bf16 %v1937_v14, %v1534_v13 }
 0x228   : > { %3396 = vmatmul.mubr.msk.bf16.gmra.mxu0 %vm765_vm1, %v1945_v55 }
 0x229   : > { %3399 = vmatprep.mubr.msk.bf16.mxu0 %vm765_vm1, %v4367_v20  ;;  %v3543_v20 = vld [vmem:[%s4950_s3] sm:$0xff]  }
 0x22a   : > { %3417 = vmatprep.subr.bf16.mxu1 %v3543_v20 }
 0x22b   : > { %3418 = vmatpush3.bf16.msra.mxu1 %v3543_v20 }
 0x22e   : > { %3360 = vmatmul.mubr.msk.bf16.gmra.mxu1 %vm765_vm1, %v1546_v63 }
 0x22f   : > { %3363 = vmatprep.mubr.msk.bf16.mxu1 %vm765_vm1, %v1547_v6 }
 0x230   : > { %3400 = vmatmul.mubr.msk.bf16.gmra.mxu0 %vm765_vm1, %v4386_v36 }
 0x231   : > { %3403 = vmatprep.mubr.msk.bf16.mxu0 %vm765_vm1, %v4390_v45 }
 0x236   : > { %3364 = vmatmul.mubr.msk.bf16.gmra.mxu1 %vm765_vm1, %v1548_v0 }
 0x237   : > { %3367 = vmatprep.mubr.msk.bf16.mxu1 %vm765_vm1, %v1549_v4 }
 0x238   : > { %3404 = vmatmul.mubr.msk.bf16.gmra.mxu0 %vm765_vm1, %v1949_v11 }
 0x239   : > { %3407 = vmatprep.mubr.msk.bf16.mxu0 %vm765_vm1, %v4424_v7 }
 0x23e   : > { %3368 = vmatmul.mubr.msk.bf16.gmra.mxu1 %vm765_vm1, %v1550_v2 }
 0x240   : > { %3408 = vmatmul.mubr.msk.bf16.gmra.mxu0 %vm765_vm1, %v4455_v18 }
 0x241   : > { %3411 = vmatprep.mubr.msk.bf16.mxu0 %vm765_vm1, %v4459_v25 }
 0x248   : > { %3412 = vmatmul.mubr.msk.bf16.gmra.mxu0 %vm765_vm1, %v1953_v19 }
 0x26c   : > { %v3297_v21 = vpop.f32.mrf.mxu0 }
 0x26d   : > { %1473 = vst.msk [vmem:[#allocation3 + $0x10] sm:$0xff] %vm1470_vm6, %v3297_v21 }
 0x26e   : > { %v1343_v33 = vpop.f32.mrf.mxu0 }
 0x26f   : > { %1471 = vst.msk [vmem:[#allocation3] sm:$0xff] %vm1470_vm6, %v1343_v33 }
 0x270   : > { %v3298_v34 = vpop.f32.mrf.mxu0 }
 0x271   : > { %1474 = vst.msk [vmem:[#allocation3 + $0x18] sm:$0xff] %vm1470_vm6, %v3298_v34 }
 0x272   : > { %v1346_v35 = vpop.f32.mrf.mxu0 }
 0x273   : > { %1472 = vst.msk [vmem:[#allocation3 + $0x8] sm:$0xff] %vm1470_vm6, %v1346_v35 }
 0x274   : > { %v1811_v47 = vld [vmem:[#allocation3 + $0x10] sm:$0xff] }
 0x275   : > { %v3301_v36 = vpop.f32.mrf.mxu0 }
 0x276   : > { %1477 = vst.msk [vmem:[#allocation3 + $0x30] sm:$0xff] %vm1470_vm6, %v3301_v36  ;;  %v1809_v50 = vld [vmem:[#allocation3] sm:$0xff] }
 0x277   : > { %v1359_v45 = vpop.f32.mrf.mxu0 }
 0x278   : > { %1475 = vst.msk [vmem:[#allocation3 + $0x20] sm:$0xff] %vm1470_vm6, %v1359_v45  ;;  %v1812_v27 = vld [vmem:[#allocation3 + $0x18] sm:$0xff] }
 0x279   : > { %v3302_v46 = vpop.f32.mrf.mxu0 }
 0x27a   : > { %1478 = vst.msk [vmem:[#allocation3 + $0x38] sm:$0xff] %vm1470_vm6, %v3302_v46  ;;  %v1810_v24 = vld [vmem:[#allocation3 + $0x8] sm:$0xff] }
 0x27b   : > { %v1362_v60 = vpop.f32.mrf.mxu0 }
 0x27c   : > { %1476 = vst.msk [vmem:[#allocation3 + $0x28] sm:$0xff] %vm1470_vm6, %v1362_v60 }
 0x27d   : > { %v1815_v54 = vld [vmem:[#allocation3 + $0x30] sm:$0xff] }
 0x27f   : > { %v1813_v56 = vld [vmem:[#allocation3 + $0x20] sm:$0xff] }
 0x281   : > { %v1816_v63 = vld [vmem:[#allocation3 + $0x38] sm:$0xff] }
 0x283   : > { %v1814_v2 = vld [vmem:[#allocation3 + $0x28] sm:$0xff] }
 0x286   : > { %v3309_v62 = vpop.f32.mrf.mxu1 }
 0x287   : > { %1485 = vst.msk [vmem:[#allocation3 + $0x70] sm:$0xff] %vm1470_vm6, %v3309_v62 }
 0x288   : > { %v1391_v5 = vpop.f32.mrf.mxu1 }
 0x289   : > { %1483 = vst.msk [vmem:[#allocation3 + $0x60] sm:$0xff] %vm1470_vm6, %v1391_v5 }
 0x28a   : > { %v3310_v6 = vpop.f32.mrf.mxu1 }
 0x28b   : > { %1486 = vst.msk [vmem:[#allocation3 + $0x78] sm:$0xff] %vm1470_vm6, %v3310_v6 }
 0x28c   : > { %v1394_v7 = vpop.f32.mrf.mxu1 }
 0x28d   : > { %1484 = vst.msk [vmem:[#allocation3 + $0x68] sm:$0xff] %vm1470_vm6, %v1394_v7 }
 0x298   : > { %v3313_v8 = vpop.f32.mrf.mxu1 }
 0x299   : > { %1489 = vst.msk [vmem:[#allocation3 + $0x90] sm:$0xff] %vm1470_vm6, %v3313_v8 }
 0x29a   : > { %v1407_v9 = vpop.f32.mrf.mxu1 }
 0x29b   : > { %1487 = vst.msk [vmem:[#allocation3 + $0x80] sm:$0xff] %vm1470_vm6, %v1407_v9 }
 0x29c   : > { %v3314_v10 = vpop.f32.mrf.mxu1 }
 0x29d   : > { %1490 = vst.msk [vmem:[#allocation3 + $0x98] sm:$0xff] %vm1470_vm6, %v3314_v10 }
 0x29e   : > { %v1410_v12 = vpop.f32.mrf.mxu1 }
 0x29f   : > { %1488 = vst.msk [vmem:[#allocation3 + $0x88] sm:$0xff] %vm1470_vm6, %v1410_v12 }
 0x2a1   : > { %v3317_v58 = vpop.f32.mrf.mxu1 }
 0x2a2   : > { %1493 = vst.msk [vmem:[#allocation3 + $0xb0] sm:$0xff] %vm1470_vm6, %v3317_v58 }
 0x2a3   : > { %v1423_v61 = vpop.f32.mrf.mxu1 }
 0x2a4   : > { %1491 = vst.msk [vmem:[#allocation3 + $0xa0] sm:$0xff] %vm1470_vm6, %v1423_v61 }
 0x2a5   : > { %v3318_v43 = vpop.f32.mrf.mxu1 }
 0x2a6   : > { %1494 = vst.msk [vmem:[#allocation3 + $0xb8] sm:$0xff] %vm1470_vm6, %v3318_v43  ;;  %v4618_v43 = vld [vmem:[%s4953_s6] ss:$0 sm:$0xff] }
 0x2a7   : > { %v1426_v39 = vpop.f32.mrf.mxu1 }
 0x2a8   : > { %1492 = vst.msk [vmem:[#allocation3 + $0xa8] sm:$0xff] %vm1470_vm6, %v1426_v39 }
 0x2af   : > { %v3321_v31 = vpop.f32.mrf.mxu1 }
 0x2b0   : > { %1497 = vst.msk [vmem:[#allocation3 + $0xd0] sm:$0xff] %vm1470_vm6, %v3321_v31 }
 0x2b1   : > { %v1439_v51 = vpop.f32.mrf.mxu1 }
 0x2b2   : > { %1495 = vst.msk [vmem:[#allocation3 + $0xc0] sm:$0xff] %vm1470_vm6, %v1439_v51 }
 0x2b3   : > { %v3322_v15 = vpop.f32.mrf.mxu1 }
 0x2b4   : > { %1498 = vst.msk [vmem:[#allocation3 + $0xd8] sm:$0xff] %vm1470_vm6, %v3322_v15 }
 0x2b5   : > { %v1442_v17 = vpop.f32.mrf.mxu1 }
 0x2b6   : > { %1496 = vst.msk [vmem:[#allocation3 + $0xc8] sm:$0xff] %vm1470_vm6, %v1442_v17 }
 0x2bd   : > { %v3325_v18 = vpop.f32.mrf.mxu1 }
 0x2be   : > { %1501 = vst.msk [vmem:[#allocation3 + $0xf0] sm:$0xff] %vm1470_vm6, %v3325_v18 }
 0x2bf   : > { %v1455_v25 = vpop.f32.mrf.mxu1 }
 0x2c0   : > { %1499 = vst.msk [vmem:[#allocation3 + $0xe0] sm:$0xff] %vm1470_vm6, %v1455_v25 }
 0x2c1   : > { %v3326_v26 = vpop.f32.mrf.mxu1 }
 0x2c2   : > { %1502 = vst.msk [vmem:[#allocation3 + $0xf8] sm:$0xff] %vm1470_vm6, %v3326_v26 }
 0x2c3   : > { %v1458_v29 = vpop.f32.mrf.mxu1 }
 0x2c4   : > { %1500 = vst.msk [vmem:[#allocation3 + $0xe8] sm:$0xff] %vm1470_vm6, %v1458_v29 }
 0x2c5   : > { %v3341_v32 = vpop.f32.mrf.mxu1 }
 0x2c6   : > { %v1843_v48 = vadd.f32 %v3341_v32, %v1811_v47  ;;  %v1823_v47 = vld [vmem:[#allocation3 + $0x70] sm:$0xff] }
 0x2c7   : > { %v1682_v49 = vpop.f32.mrf.mxu1 }
 0x2c8   : > { %1875 = vst.msk [vmem:[#allocation3 + $0x10] sm:$0xff] %vm1470_vm6, %v1843_v48  ;;  %v1841_v52 = vadd.f32 %v1809_v50, %v1682_v49  ;;  %v3305_v53 = vpop.f32.mrf.mxu0 }
 0x2c9   : > { %1481 = vst.msk [vmem:[#allocation3 + $0x50] sm:$0xff] %vm1470_vm6, %v3305_v53  ;;  %v3342_v16 = vpop.f32.mrf.mxu1 }
 0x2ca   : > { %1873 = vst.msk [vmem:[#allocation3] sm:$0xff] %vm1470_vm6, %v1841_v52  ;;  %v1844_v30 = vadd.f32 %v3342_v16, %v1812_v27  ;;  %v1375_v22 = vpop.f32.mrf.mxu0 }
 0x2cb   : > { %1479 = vst.msk [vmem:[#allocation3 + $0x40] sm:$0xff] %vm1470_vm6, %v1375_v22  ;;  %v1685_v23 = vpop.f32.mrf.mxu1  ;;  %v1821_v22 = vld [vmem:[#allocation3 + $0x60] sm:$0xff] }
 0x2cc   : > { %1876 = vst.msk [vmem:[#allocation3 + $0x18] sm:$0xff] %vm1470_vm6, %v1844_v30  ;;  %v1842_v37 = vadd.f32 %v1810_v24, %v1685_v23  ;;  %v3306_v38 = vpop.f32.mrf.mxu0  ;;  %v4630_v24 = vld [vmem:[%s4954_s7] ss:$0 sm:$0xff] }
 0x2cd   : > { %1482 = vst.msk [vmem:[#allocation3 + $0x58] sm:$0xff] %vm1470_vm6, %v3306_v38 }
 0x2ce   : > { %v3345_v44 = vpop.f32.mrf.mxu1  ;;  %1874 = vst.msk [vmem:[#allocation3 + $0x8] sm:$0xff] %vm1470_vm6, %v1842_v37  ;;  %v1378_v40 = vpop.f32.mrf.mxu0 }
 0x2cf   : > { %v1847_v28 = vadd.f32 %v3345_v44, %v1815_v54  ;;  %1480 = vst.msk [vmem:[#allocation3 + $0x48] sm:$0xff] %vm1470_vm6, %v1378_v40  ;;  %v2214_v41 = vld [vmem:[#allocation3 + $0x10] sm:$0xff] }
 0x2d0   : > { %v1698_v3 = vpop.f32.mrf.mxu1  ;;  %v3385_v55 = vpop.f32.mrf.mxu0  ;;  %v1819_v34 = vld [vmem:[#allocation3 + $0x50] sm:$0xff] }
 0x2d1   : > { %1879 = vst.msk [vmem:[#allocation3 + $0x30] sm:$0xff] %vm1470_vm6, %v1847_v28  ;;  %v1845_v42 = vadd.f32 %v1813_v56, %v1698_v3  ;;  %v2246_v57 = vadd.f32 %v3385_v55, %v2214_v41  ;;  %v2212_v0 = vld [vmem:[#allocation3] sm:$0xff]  ;;  %v1824_v3 = vld [vmem:[#allocation3 + $0x78] sm:$0xff] }
 0x2d2   : > { %v3346_v59 = vpop.f32.mrf.mxu1  ;;  %v2085_v4 = vpop.f32.mrf.mxu0  ;;  %v1817_v62 = vld [vmem:[#allocation3 + $0x40] sm:$0xff] }
 0x2d3   : > { %1877 = vst.msk [vmem:[#allocation3 + $0x20] sm:$0xff] %vm1470_vm6, %v1845_v42  ;;  %v1848_v1 = vadd.f32 %v3346_v59, %v1816_v63  ;;  %2278 = vst.msk [vmem:[#allocation3 + $0x10] sm:$0xff] %vm1470_vm6, %v2246_v57  ;;  %v2244_v11 = vadd.f32 %v2212_v0, %v2085_v4  ;;  %v2215_v14 = vld [vmem:[#allocation3 + $0x18] sm:$0xff]  ;;  %v1822_v4 = vld [vmem:[#allocation3 + $0x68] sm:$0xff] }
 0x2d4   : > { %v1701_v13 = vpop.f32.mrf.mxu1  ;;  %v3386_v20 = vpop.f32.mrf.mxu0  ;;  %v1820_v10 = vld [vmem:[#allocation3 + $0x58] sm:$0xff] }
 0x2d5   : > { %1880 = vst.msk [vmem:[#allocation3 + $0x38] sm:$0xff] %vm1470_vm6, %v1848_v1  ;;  %v1846_v19 = vadd.f32 %v1814_v2, %v1701_v13  ;;  %2276 = vst.msk [vmem:[#allocation3] sm:$0xff] %vm1470_vm6, %v2244_v11  ;;  %v2247_v21 = vadd.f32 %v3386_v20, %v2215_v14  ;;  %v2213_v35 = vld [vmem:[#allocation3 + $0x8] sm:$0xff] }
 0x2d6   : > { %v3349_v33 = vpop.f32.mrf.mxu1  ;;  %v2088_v45 = vpop.f32.mrf.mxu0  ;;  %v1818_v51 = vld [vmem:[#allocation3 + $0x48] sm:$0xff] }
 0x2d7   : > { %1878 = vst.msk [vmem:[#allocation3 + $0x28] sm:$0xff] %vm1470_vm6, %v1846_v19  ;;  %v1851_v36 = vadd.f32 %v3349_v33, %v1819_v34  ;;  %2279 = vst.msk [vmem:[#allocation3 + $0x18] sm:$0xff] %vm1470_vm6, %v2247_v21  ;;  %v2245_v46 = vadd.f32 %v2213_v35, %v2088_v45  ;;  %v1827_v35 = vld [vmem:[#allocation3 + $0x90] sm:$0xff] }
 0x2d8   : > { %v1714_v60 = vpop.f32.mrf.mxu1  ;;  %v2218_v5 = vld [vmem:[#allocation3 + $0x30] sm:$0xff]  ;;  %v3389_v7 = vpop.f32.mrf.mxu0 }
 0x2d9   : > { %1883 = vst.msk [vmem:[#allocation3 + $0x50] sm:$0xff] %vm1470_vm6, %v1851_v36  ;;  %v1849_v6 = vadd.f32 %v1817_v62, %v1714_v60  ;;  %2277 = vst.msk [vmem:[#allocation3 + $0x8] sm:$0xff] %vm1470_vm6, %v2245_v46  ;;  %v2250_v8 = vadd.f32 %v3389_v7, %v2218_v5 }
 0x2da   : > { %v3350_v9 = vpop.f32.mrf.mxu1  ;;  %v2216_v12 = vld [vmem:[#allocation3 + $0x20] sm:$0xff]  ;;  %v2101_v61 = vpop.f32.mrf.mxu0  ;;  %v2310_v17 = vld [vmem:[#allocation3 + $0x10] sm:$0xff] }
 0x2db   : > { %1881 = vst.msk [vmem:[#allocation3 + $0x40] sm:$0xff] %vm1470_vm6, %v1849_v6  ;;  %v1852_v58 = vadd.f32 %v3350_v9, %v1820_v10  ;;  %2282 = vst.msk [vmem:[#allocation3 + $0x30] sm:$0xff] %vm1470_vm6, %v2250_v8  ;;  %v2248_v39 = vadd.f32 %v2216_v12, %v2101_v61  ;;  %v2349_v16 = vmul.f32 %v4618_v43, %v2310_v17  ;;  %v1825_v12 = vld [vmem:[#allocation3 + $0x80] sm:$0xff] }
 0x2dc   : > { %v1717_v31 = vpop.f32.mrf.mxu1  ;;  %v2219_v15 = vld [vmem:[#allocation3 + $0x38] sm:$0xff]  ;;  %v3390_v25 = vpop.f32.mrf.mxu0  ;;  %v2308_v26 = vld [vmem:[#allocation3] sm:$0xff] }
 0x2dd   : > { %1884 = vst.msk [vmem:[#allocation3 + $0x58] sm:$0xff] %vm1470_vm6, %v1852_v58  ;;  %v1850_v18 = vadd.f32 %v1818_v51, %v1717_v31  ;;  %2280 = vst.msk [vmem:[#allocation3 + $0x20] sm:$0xff] %vm1470_vm6, %v2248_v39  ;;  %v2251_v29 = vadd.f32 %v3390_v25, %v2219_v15  ;;  %v2347_v49 = vmul.f32 %v4618_v43, %v2308_v26  ;;  %v1828_v26 = vld [vmem:[#allocation3 + $0x98] sm:$0xff] }
 0x2de   : > { %v3353_v32 = vpop.f32.mrf.mxu1  ;;  %v2217_v48 = vld [vmem:[#allocation3 + $0x28] sm:$0xff]  ;;  %v2104_v52 = vpop.f32.mrf.mxu0  ;;  %v2311_v53 = vld [vmem:[#allocation3 + $0x18] sm:$0xff]  ;;  %v2388_v63 = vadd.f32 %v4630_v24, %v2349_v16 }
 0x2df   : > { %1882 = vst.msk [vmem:[#allocation3 + $0x48] sm:$0xff] %vm1470_vm6, %v1850_v18  ;;  %v1855_v50 = vadd.f32 %v3353_v32, %v1823_v47  ;;  %2283 = vst.msk [vmem:[#allocation3 + $0x38] sm:$0xff] %vm1470_vm6, %v2251_v29  ;;  %v2249_v27 = vadd.f32 %v2217_v48, %v2104_v52  ;;  %v2350_v37 = vmul.f32 %v4618_v43, %v2311_v53 }
 0x2e0   : > { %v1730_v30 = vpop.f32.mrf.mxu1  ;;  %v2222_v23 = vld [vmem:[#allocation3 + $0x50] sm:$0xff]  ;;  %v3393_v44 = vpop.f32.mrf.mxu0  ;;  %v2309_v54 = vld [vmem:[#allocation3 + $0x8] sm:$0xff]  ;;  %v2386_v42 = vadd.f32 %v4630_v24, %v2347_v49  ;;  %v2420_v6 = vmax.f32 %v2388_v63, 0.0 }
 0x2e1   : > { %1887 = vst.msk [vmem:[#allocation3 + $0x70] sm:$0xff] %vm1470_vm6, %v1855_v50  ;;  %v1853_v38 = vadd.f32 %v1821_v22, %v1730_v30  ;;  %2281 = vst.msk [vmem:[#allocation3 + $0x28] sm:$0xff] %vm1470_vm6, %v2249_v27  ;;  %v2254_v28 = vadd.f32 %v3393_v44, %v2222_v23  ;;  %v2348_v41 = vmul.f32 %v4618_v43, %v2309_v54  ;;  %v1826_v27 = vld [vmem:[#allocation3 + $0x88] sm:$0xff] }
 0x2e2   : > { %v3354_v40 = vpop.f32.mrf.mxu1  ;;  %v2220_v56 = vld [vmem:[#allocation3 + $0x40] sm:$0xff]  ;;  %v2389_v55 = vadd.f32 %v4630_v24, %v2350_v37  ;;  %v2117_v59 = vpop.f32.mrf.mxu0  ;;  %v2314_v2 = vld [vmem:[#allocation3 + $0x30] sm:$0xff]  ;;  %v2418_v45 = vmax.f32 %v2386_v42, 0.0 }
 0x2e3   : > { %1885 = vst.msk [vmem:[#allocation3 + $0x60] sm:$0xff] %vm1470_vm6, %v1853_v38  ;;  %v1856_v57 = vadd.f32 %v3354_v40, %v1824_v3  ;;  %2286 = vst.msk [vmem:[#allocation3 + $0x50] sm:$0xff] %vm1470_vm6, %v2254_v28  ;;  %v2252_v0 = vadd.f32 %v2220_v56, %v2117_v59  ;;  %v2387_v13 = vadd.f32 %v4630_v24, %v2348_v41  ;;  %v1831_v3 = vld [vmem:[#allocation3 + $0xb0] sm:$0xff] }
 0x2e4   : > { %v1733_v1 = vpop.f32.mrf.mxu1  ;;  %v2223_v11 = vld [vmem:[#allocation3 + $0x58] sm:$0xff]  ;;  %v3394_v19 = vpop.f32.mrf.mxu0  ;;  %v2421_v20 = vmax.f32 %v2389_v55, 0.0  ;;  %v2312_v21 = vld [vmem:[#allocation3 + $0x20] sm:$0xff]  ;;  %v2353_v8 = vmul.f32 %v4618_v43, %v2314_v2 }
 0x2e5   : > { %1888 = vst.msk [vmem:[#allocation3 + $0x78] sm:$0xff] %vm1470_vm6, %v1856_v57  ;;  %v1854_v14 = vadd.f32 %v1822_v4, %v1733_v1  ;;  %2284 = vst.msk [vmem:[#allocation3 + $0x40] sm:$0xff] %vm1470_vm6, %v2252_v0  ;;  %v2255_v33 = vadd.f32 %v3394_v19, %v2223_v11  ;;  %v2419_v46 = vmax.f32 %v2387_v13, 0.0  ;;  %v2351_v60 = vmul.f32 %v4618_v43, %v2312_v21  ;;  %v1829_v13 = vld [vmem:[#allocation3 + $0xa0] sm:$0xff] }
 0x2e6   : > { %v3357_v34 = vpop.f32.mrf.mxu1  ;;  %v2221_v36 = vld [vmem:[#allocation3 + $0x48] sm:$0xff]  ;;  %v2120_v5 = vpop.f32.mrf.mxu0  ;;  %v2315_v7 = vld [vmem:[#allocation3 + $0x38] sm:$0xff]  ;;  %v2451_v15 = vpack.c.bf16 %v2421_v20, %v2420_v6  ;;  %v2392_v52 = vadd.f32 %v4630_v24, %v2353_v8 }
 0x2e7   : > { %1886 = vst.msk [vmem:[#allocation3 + $0x68] sm:$0xff] %vm1470_vm6, %v1854_v14  ;;  %v1859_v62 = vadd.f32 %v3357_v34, %v1827_v35  ;;  %2287 = vst.msk [vmem:[#allocation3 + $0x58] sm:$0xff] %vm1470_vm6, %v2255_v33  ;;  %v2253_v9 = vadd.f32 %v2221_v36, %v2120_v5  ;;  %v2450_v61 = vpack.c.bf16 %v2419_v46, %v2418_v45  ;;  %v1832_v45 = vld [vmem:[#allocation3 + $0xb8] sm:$0xff] }
 0x2e8   : > { %v1746_v10 = vpop.f32.mrf.mxu1  ;;  %v2226_v58 = vld [vmem:[#allocation3 + $0x70] sm:$0xff]  ;;  %v2354_v39 = vmul.f32 %v4618_v43, %v2315_v7  ;;  %v3397_v51 = vpop.f32.mrf.mxu0  ;;  %v2313_v17 = vld [vmem:[#allocation3 + $0x28] sm:$0xff]  ;;  %v2390_v47 = vadd.f32 %v4630_v24, %v2351_v60  ;;  %v2424_v63 = vmax.f32 %v2392_v52, 0.0 }
 0x2e9   : > { %1891 = vst.msk [vmem:[#allocation3 + $0x90] sm:$0xff] %vm1470_vm6, %v1859_v62  ;;  %v1857_v31 = vadd.f32 %v1825_v12, %v1746_v10  ;;  %2285 = vst.msk [vmem:[#allocation3 + $0x48] sm:$0xff] %vm1470_vm6, %v2253_v9  ;;  %v2258_v18 = vadd.f32 %v3397_v51, %v2226_v58  ;;  %3419 = vmatprep.mubr.msk.bf16.mxu1 %vm1470_vm6, %v2450_v61  ;;  %v2352_v32 = vmul.f32 %v4618_v43, %v2313_v17  ;;  %v1830_v12 = vld [vmem:[#allocation3 + $0xa8] sm:$0xff] }
 0x2ea   : > { %v3358_v25 = vpop.f32.mrf.mxu1  ;;  %v2224_v29 = vld [vmem:[#allocation3 + $0x60] sm:$0xff]  ;;  %v2393_v48 = vadd.f32 %v4630_v24, %v2354_v39  ;;  %v2133_v50 = vpop.f32.mrf.mxu0  ;;  %3420 = vmatmul.mubr.msk.bf16.vlgmr.msra.gmra.mxu1 %vm1470_vm6, %v2451_v15  ;;  %v2318_v23 = vld [vmem:[#allocation3 + $0x50] sm:$0xff]  ;;  %v2422_v41 = vmax.f32 %v2390_v47, 0.0 }
 0x2eb   : > { %1889 = vst.msk [vmem:[#allocation3 + $0x80] sm:$0xff] %vm1470_vm6, %v1857_v31  ;;  %v1860_v49 = vadd.f32 %v3358_v25, %v1828_v26  ;;  %2290 = vst.msk [vmem:[#allocation3 + $0x70] sm:$0xff] %vm1470_vm6, %v2258_v18  ;;  %v2256_v53 = vadd.f32 %v2224_v29, %v2133_v50  ;;  %v2391_v22 = vadd.f32 %v4630_v24, %v2352_v32  ;;  %v1835_v26 = vld [vmem:[#allocation3 + $0xd0] sm:$0xff] }
 0x2ec   : > { %v1749_v16 = vpop.f32.mrf.mxu1  ;;  %v2227_v30 = vld [vmem:[#allocation3 + $0x78] sm:$0xff]  ;;  %v3398_v38 = vpop.f32.mrf.mxu0  ;;  %v2425_v44 = vmax.f32 %v2393_v48, 0.0  ;;  %v2316_v54 = vld [vmem:[#allocation3 + $0x40] sm:$0xff]  ;;  %v2357_v1 = vmul.f32 %v4618_v43, %v2318_v23 }
 0x2ed   : > { %1892 = vst.msk [vmem:[#allocation3 + $0x98] sm:$0xff] %vm1470_vm6, %v1860_v49  ;;  %v1858_v37 = vadd.f32 %v1826_v27, %v1749_v16  ;;  %2288 = vst.msk [vmem:[#allocation3 + $0x60] sm:$0xff] %vm1470_vm6, %v2256_v53  ;;  %v2259_v28 = vadd.f32 %v3398_v38, %v2227_v30  ;;  %v2423_v42 = vmax.f32 %v2391_v22, 0.0  ;;  %v2355_v55 = vmul.f32 %v4618_v43, %v2316_v54  ;;  %v1833_v22 = vld [vmem:[#allocation3 + $0xc0] sm:$0xff] }
 0x2ee   : > { %v3361_v40 = vpop.f32.mrf.mxu1  ;;  %v2225_v56 = vld [vmem:[#allocation3 + $0x68] sm:$0xff]  ;;  %v2136_v59 = vpop.f32.mrf.mxu0  ;;  %v2319_v0 = vld [vmem:[#allocation3 + $0x58] sm:$0xff]  ;;  %v2453_v33 = vpack.c.bf16 %v2425_v44, %v2424_v63  ;;  %v2396_v8 = vadd.f32 %v4630_v24, %v2357_v1 }
 0x2ef   : > { %1890 = vst.msk [vmem:[#allocation3 + $0x88] sm:$0xff] %vm1470_vm6, %v1858_v37  ;;  %v1863_v57 = vadd.f32 %v3361_v40, %v1831_v3  ;;  %2291 = vst.msk [vmem:[#allocation3 + $0x78] sm:$0xff] %vm1470_vm6, %v2259_v28  ;;  %v2257_v4 = vadd.f32 %v2225_v56, %v2136_v59  ;;  %v2452_v14 = vpack.c.bf16 %v2423_v42, %v2422_v41  ;;  %v1836_v41 = vld [vmem:[#allocation3 + $0xd8] sm:$0xff] }
 0x2f0   : > { %v1762_v11 = vpop.f32.mrf.mxu1  ;;  %v2230_v2 = vld [vmem:[#allocation3 + $0x90] sm:$0xff]  ;;  %v2358_v19 = vmul.f32 %v4618_v43, %v2319_v0  ;;  %v3401_v21 = vpop.f32.mrf.mxu0  ;;  %v2317_v34 = vld [vmem:[#allocation3 + $0x48] sm:$0xff]  ;;  %v2394_v62 = vadd.f32 %v4630_v24, %v2355_v55  ;;  %v2428_v52 = vmax.f32 %v2396_v8, 0.0 }
 0x2f1   : > { %1895 = vst.msk [vmem:[#allocation3 + $0xb0] sm:$0xff] %vm1470_vm6, %v1863_v57  ;;  %v1861_v20 = vadd.f32 %v1829_v13, %v1762_v11  ;;  %2289 = vst.msk [vmem:[#allocation3 + $0x68] sm:$0xff] %vm1470_vm6, %v2257_v4  ;;  %v2262_v35 = vadd.f32 %v3401_v21, %v2230_v2  ;;  %3423 = vmatprep.mubr.msk.bf16.mxu1 %vm1470_vm6, %v2452_v14  ;;  %v2356_v60 = vmul.f32 %v4618_v43, %v2317_v34  ;;  %v1834_v13 = vld [vmem:[#allocation3 + $0xc8] sm:$0xff] }
 0x2f2   : > { %v3362_v36 = vpop.f32.mrf.mxu1  ;;  %v2228_v46 = vld [vmem:[#allocation3 + $0x80] sm:$0xff]  ;;  %v2397_v5 = vadd.f32 %v4630_v24, %v2358_v19  ;;  %v2149_v7 = vpop.f32.mrf.mxu0  ;;  %3424 = vmatmul.mubr.msk.bf16.gmra.mxu1 %vm1470_vm6, %v2453_v33  ;;  %v2322_v39 = vld [vmem:[#allocation3 + $0x70] sm:$0xff]  ;;  %v2426_v32 = vmax.f32 %v2394_v62, 0.0 }
 0x2f3   : > { %1893 = vst.msk [vmem:[#allocation3 + $0xa0] sm:$0xff] %vm1470_vm6, %v1861_v20  ;;  %v1864_v6 = vadd.f32 %v3362_v36, %v1832_v45  ;;  %2294 = vst.msk [vmem:[#allocation3 + $0x90] sm:$0xff] %vm1470_vm6, %v2262_v35  ;;  %v2260_v9 = vadd.f32 %v2228_v46, %v2149_v7  ;;  %v2395_v61 = vadd.f32 %v4630_v24, %v2356_v60  ;;  %v1839_v45 = vld [vmem:[#allocation3 + $0xf0] sm:$0xff] }
 0x2f4   : > { %v1765_v10 = vpop.f32.mrf.mxu1  ;;  %v2231_v58 = vld [vmem:[#allocation3 + $0x98] sm:$0xff]  ;;  %v3402_v51 = vpop.f32.mrf.mxu0  ;;  %v2429_v15 = vmax.f32 %v2397_v5, 0.0  ;;  %v2320_v17 = vld [vmem:[#allocation3 + $0x60] sm:$0xff]  ;;  %v2361_v16 = vmul.f32 %v4618_v43, %v2322_v39 }
 0x2f5   : > { %1896 = vst.msk [vmem:[#allocation3 + $0xb8] sm:$0xff] %vm1470_vm6, %v1864_v6  ;;  %v1862_v31 = vadd.f32 %v1830_v12, %v1765_v10  ;;  %2292 = vst.msk [vmem:[#allocation3 + $0x80] sm:$0xff] %vm1470_vm6, %v2260_v9  ;;  %v2263_v18 = vadd.f32 %v3402_v51, %v2231_v58  ;;  %v2427_v47 = vmax.f32 %v2395_v61, 0.0  ;;  %v2359_v48 = vmul.f32 %v4618_v43, %v2320_v17  ;;  %v1837_v61 = vld [vmem:[#allocation3 + $0xe0] sm:$0xff] }
 0x2f6   : > { %v3365_v25 = vpop.f32.mrf.mxu1  ;;  %v2229_v29 = vld [vmem:[#allocation3 + $0x88] sm:$0xff]  ;;  %v2152_v50 = vpop.f32.mrf.mxu0  ;;  %v2323_v53 = vld [vmem:[#allocation3 + $0x78] sm:$0xff]  ;;  %v2455_v28 = vpack.c.bf16 %v2429_v15, %v2428_v52  ;;  %v2400_v1 = vadd.f32 %v4630_v24, %v2361_v16 }
 0x2f7   : > { %1894 = vst.msk [vmem:[#allocation3 + $0xa8] sm:$0xff] %vm1470_vm6, %v1862_v31  ;;  %v1867_v49 = vadd.f32 %v3365_v25, %v1835_v26  ;;  %2295 = vst.msk [vmem:[#allocation3 + $0x98] sm:$0xff] %vm1470_vm6, %v2263_v18  ;;  %v2261_v27 = vadd.f32 %v2229_v29, %v2152_v50  ;;  %v2454_v37 = vpack.c.bf16 %v2427_v47, %v2426_v32  ;;  %v1840_v32 = vld [vmem:[#allocation3 + $0xf8] sm:$0xff] }
 0x2f8   : > { %v1778_v30 = vpop.f32.mrf.mxu1  ;;  %v2234_v23 = vld [vmem:[#allocation3 + $0xb0] sm:$0xff]  ;;  %v2362_v38 = vmul.f32 %v4618_v43, %v2323_v53  ;;  %v3405_v54 = vpop.f32.mrf.mxu0  ;;  %v2321_v40 = vld [vmem:[#allocation3 + $0x68] sm:$0xff]  ;;  %v2398_v57 = vadd.f32 %v4630_v24, %v2359_v48  ;;  %v2432_v8 = vmax.f32 %v2400_v1, 0.0 }
 0x2f9   : > { %1899 = vst.msk [vmem:[#allocation3 + $0xd0] sm:$0xff] %vm1470_vm6, %v1867_v49  ;;  %v1865_v44 = vadd.f32 %v1833_v22, %v1778_v30  ;;  %2293 = vst.msk [vmem:[#allocation3 + $0x88] sm:$0xff] %vm1470_vm6, %v2261_v27  ;;  %v2266_v3 = vadd.f32 %v3405_v54, %v2234_v23  ;;  %3427 = vmatprep.mubr.msk.bf16.mxu1 %vm1470_vm6, %v2454_v37  ;;  %v2360_v55 = vmul.f32 %v4618_v43, %v2321_v40  ;;  %v1838_v22 = vld [vmem:[#allocation3 + $0xe8] sm:$0xff] }
 0x2fa   : > { %v3366_v56 = vpop.f32.mrf.mxu1  ;;  %v2232_v42 = vld [vmem:[#allocation3 + $0xa0] sm:$0xff]  ;;  %v2401_v59 = vadd.f32 %v4630_v24, %v2362_v38  ;;  %v2165_v0 = vpop.f32.mrf.mxu0  ;;  %3428 = vmatmul.mubr.msk.bf16.gmra.mxu1 %vm1470_vm6, %v2455_v28  ;;  %v2326_v19 = vld [vmem:[#allocation3 + $0x90] sm:$0xff]  ;;  %v2430_v60 = vmax.f32 %v2398_v57, 0.0 }
 0x2fb   : > { %1897 = vst.msk [vmem:[#allocation3 + $0xc0] sm:$0xff] %vm1470_vm6, %v1865_v44  ;;  %v1868_v63 = vadd.f32 %v3366_v56, %v1836_v41  ;;  %2298 = vst.msk [vmem:[#allocation3 + $0xb0] sm:$0xff] %vm1470_vm6, %v2266_v3  ;;  %v2264_v4 = vadd.f32 %v2232_v42, %v2165_v0  ;;  %v2399_v14 = vadd.f32 %v4630_v24, %v2360_v55 }
 0x2fc   : > { %v1781_v11 = vpop.f32.mrf.mxu1  ;;  %v2235_v2 = vld [vmem:[#allocation3 + $0xb8] sm:$0xff]  ;;  %v3406_v21 = vpop.f32.mrf.mxu0  ;;  %v2433_v33 = vmax.f32 %v2401_v59, 0.0  ;;  %v2324_v34 = vld [vmem:[#allocation3 + $0x80] sm:$0xff]  ;;  %v2365_v10 = vmul.f32 %v4618_v43, %v2326_v19 }
 0x2fd   : > { %1900 = vst.msk [vmem:[#allocation3 + $0xd8] sm:$0xff] %vm1470_vm6, %v1868_v63  ;;  %v1866_v20 = vadd.f32 %v1834_v13, %v1781_v11  ;;  %2296 = vst.msk [vmem:[#allocation3 + $0xa0] sm:$0xff] %vm1470_vm6, %v2264_v4  ;;  %v2267_v35 = vadd.f32 %v3406_v21, %v2235_v2  ;;  %v2431_v62 = vmax.f32 %v2399_v14, 0.0  ;;  %v2363_v5 = vmul.f32 %v4618_v43, %v2324_v34 }
 0x2fe   : > { %v3369_v36 = vpop.f32.mrf.mxu1  ;;  %v2233_v46 = vld [vmem:[#allocation3 + $0xa8] sm:$0xff]  ;;  %v2168_v7 = vpop.f32.mrf.mxu0  ;;  %v2327_v9 = vld [vmem:[#allocation3 + $0x98] sm:$0xff]  ;;  %v2457_v18 = vpack.c.bf16 %v2433_v33, %v2432_v8  ;;  %v2404_v16 = vadd.f32 %v4630_v24, %v2365_v10 }
 0x2ff   : > { %1898 = vst.msk [vmem:[#allocation3 + $0xc8] sm:$0xff] %vm1470_vm6, %v1866_v20  ;;  %v1871_v6 = vadd.f32 %v3369_v36, %v1839_v45  ;;  %2299 = vst.msk [vmem:[#allocation3 + $0xb8] sm:$0xff] %vm1470_vm6, %v2267_v35  ;;  %v2265_v12 = vadd.f32 %v2233_v46, %v2168_v7  ;;  %v2456_v31 = vpack.c.bf16 %v2431_v62, %v2430_v60 }
 0x300   : > { %v1794_v58 = vpop.f32.mrf.mxu1  ;;  %v2238_v39 = vld [vmem:[#allocation3 + $0xd0] sm:$0xff]  ;;  %v2366_v51 = vmul.f32 %v4618_v43, %v2327_v9  ;;  %v3409_v17 = vpop.f32.mrf.mxu0  ;;  %v2325_v25 = vld [vmem:[#allocation3 + $0x88] sm:$0xff]  ;;  %v2402_v49 = vadd.f32 %v4630_v24, %v2363_v5  ;;  %v2436_v59 = vmax.f32 %v2404_v16, 0.0 }
 0x301   : > { %1903 = vst.msk [vmem:[#allocation3 + $0xf0] sm:$0xff] %vm1470_vm6, %v1871_v6  ;;  %v1869_v15 = vadd.f32 %v1837_v61, %v1794_v58  ;;  %2297 = vst.msk [vmem:[#allocation3 + $0xa8] sm:$0xff] %vm1470_vm6, %v2265_v12  ;;  %v2270_v26 = vadd.f32 %v3409_v17, %v2238_v39  ;;  %3431 = vmatprep.mubr.msk.bf16.mxu1 %vm1470_vm6, %v2456_v31  ;;  %v2364_v48 = vmul.f32 %v4618_v43, %v2325_v25 }
 0x302   : > { %v3370_v29 = vpop.f32.mrf.mxu1  ;;  %v2236_v47 = vld [vmem:[#allocation3 + $0xc0] sm:$0xff]  ;;  %v2405_v50 = vadd.f32 %v4630_v24, %v2366_v51  ;;  %v2181_v53 = vpop.f32.mrf.mxu0  ;;  %3432 = vmatmul.mubr.msk.bf16.gmra.mxu1 %vm1470_vm6, %v2457_v18  ;;  %v2330_v38 = vld [vmem:[#allocation3 + $0xb0] sm:$0xff]  ;;  %v2434_v41 = vmax.f32 %v2402_v49, 0.0 }
 0x303   : > { %1901 = vst.msk [vmem:[#allocation3 + $0xe0] sm:$0xff] %vm1470_vm6, %v1869_v15  ;;  %v1872_v52 = vadd.f32 %v3370_v29, %v1840_v32  ;;  %2302 = vst.msk [vmem:[#allocation3 + $0xd0] sm:$0xff] %vm1470_vm6, %v2270_v26  ;;  %v2268_v27 = vadd.f32 %v2236_v47, %v2181_v53  ;;  %v2403_v37 = vadd.f32 %v4630_v24, %v2364_v48 }
 0x304   : > { %v1797_v30 = vpop.f32.mrf.mxu1  ;;  %v2239_v23 = vld [vmem:[#allocation3 + $0xd8] sm:$0xff]  ;;  %v3410_v54 = vpop.f32.mrf.mxu0  ;;  %v2437_v28 = vmax.f32 %v2405_v50, 0.0  ;;  %v2328_v40 = vld [vmem:[#allocation3 + $0xa0] sm:$0xff]  ;;  %v2369_v0 = vmul.f32 %v4618_v43, %v2330_v38 }
 0x305   : > { %1904 = vst.msk [vmem:[#allocation3 + $0xf8] sm:$0xff] %vm1470_vm6, %v1872_v52  ;;  %v1870_v44 = vadd.f32 %v1838_v22, %v1797_v30  ;;  %2300 = vst.msk [vmem:[#allocation3 + $0xc0] sm:$0xff] %vm1470_vm6, %v2268_v27  ;;  %v2271_v3 = vadd.f32 %v3410_v54, %v2239_v23  ;;  %v2435_v42 = vmax.f32 %v2403_v37, 0.0  ;;  %v2367_v55 = vmul.f32 %v4618_v43, %v2328_v40 }
 0x306   : > { %v2237_v56 = vld [vmem:[#allocation3 + $0xc8] sm:$0xff]  ;;  %v2184_v57 = vpop.f32.mrf.mxu0  ;;  %v2331_v63 = vld [vmem:[#allocation3 + $0xb8] sm:$0xff]  ;;  %v2459_v14 = vpack.c.bf16 %v2437_v28, %v2436_v59  ;;  %v2408_v45 = vadd.f32 %v4630_v24, %v2369_v0 }
 0x307   : > { %1902 = vst.msk [vmem:[#allocation3 + $0xe8] sm:$0xff] %vm1470_vm6, %v1870_v44  ;;  %2303 = vst.msk [vmem:[#allocation3 + $0xd8] sm:$0xff] %vm1470_vm6, %v2271_v3  ;;  %v2269_v1 = vadd.f32 %v2237_v56, %v2184_v57  ;;  %v2458_v11 = vpack.c.bf16 %v2435_v42, %v2434_v41  ;;  %v2370_v13 = vmul.f32 %v4618_v43, %v2331_v63 }
 0x308   : > { %v2242_v4 = vld [vmem:[#allocation3 + $0xf0] sm:$0xff]  ;;  %v3413_v2 = vpop.f32.mrf.mxu0  ;;  %v2329_v19 = vld [vmem:[#allocation3 + $0xa8] sm:$0xff]  ;;  %v2406_v34 = vadd.f32 %v4630_v24, %v2367_v55  ;;  %v2440_v31 = vmax.f32 %v2408_v45, 0.0  ;;  %v2772_v45 = vld [vmem:[%s3805_s11 + $0x18] sm:$0xff] }
 0x309   : > { %2301 = vst.msk [vmem:[#allocation3 + $0xc8] sm:$0xff] %vm1470_vm6, %v2269_v1  ;;  %v2274_v20 = vadd.f32 %v3413_v2, %v2242_v4  ;;  %3435 = vmatprep.mubr.msk.bf16.mxu1 %vm1470_vm6, %v2458_v11  ;;  %v2368_v33 = vmul.f32 %v4618_v43, %v2329_v19  ;;  %v2409_v35 = vadd.f32 %v4630_v24, %v2370_v13  ;;  %v2771_v2 = vld [vmem:[%s3805_s11 + $0x10] sm:$0xff] }
 0x30a   : > { %v2240_v21 = vld [vmem:[#allocation3 + $0xe0] sm:$0xff]  ;;  %v2197_v36 = vpop.f32.mrf.mxu0  ;;  %3436 = vmatmul.mubr.msk.bf16.gmra.mxu1 %vm1470_vm6, %v2459_v14  ;;  %v2334_v5 = vld [vmem:[#allocation3 + $0xd0] sm:$0xff]  ;;  %v2438_v12 = vmax.f32 %v2406_v34, 0.0 }
 0x30b   : > { %2306 = vst.msk [vmem:[#allocation3 + $0xf0] sm:$0xff] %vm1470_vm6, %v2274_v20  ;;  %v2272_v46 = vadd.f32 %v2240_v21, %v2197_v36  ;;  %v2407_v62 = vadd.f32 %v4630_v24, %v2368_v33  ;;  %v2441_v7 = vmax.f32 %v2409_v35, 0.0  ;;  %v2373_v15 = vmul.f32 %v4618_v43, %v2334_v5  ;;  %v2769_v21 = vld [vmem:[%s3805_s11] sm:$0xff] }
 0x30c   : > { %v2243_v60 = vld [vmem:[#allocation3 + $0xf8] sm:$0xff]  ;;  %v3414_v6 = vpop.f32.mrf.mxu0  ;;  %v2332_v8 = vld [vmem:[#allocation3 + $0xc0] sm:$0xff] }
 0x30d   : > { %2304 = vst.msk [vmem:[#allocation3 + $0xe0] sm:$0xff] %vm1470_vm6, %v2272_v46  ;;  %v2275_v9 = vadd.f32 %v3414_v6, %v2243_v60  ;;  %v2439_v58 = vmax.f32 %v2407_v62, 0.0  ;;  %v2371_v61 = vmul.f32 %v4618_v43, %v2332_v8  ;;  %v2461_v26 = vpack.c.bf16 %v2441_v7, %v2440_v31  ;;  %v2770_v7 = vld [vmem:[%s3805_s11 + $0x8] sm:$0xff] }
 0x30e   : > { %v2241_v10 = vld [vmem:[#allocation3 + $0xe8] sm:$0xff]  ;;  %v2200_v39 = vpop.f32.mrf.mxu0  ;;  %v2335_v51 = vld [vmem:[#allocation3 + $0xd8] sm:$0xff]  ;;  %v2412_v49 = vadd.f32 %v4630_v24, %v2373_v15 }
 0x30f   : > { %2307 = vst.msk [vmem:[#allocation3 + $0xf8] sm:$0xff] %vm1470_vm6, %v2275_v9  ;;  %v2273_v17 = vadd.f32 %v2241_v10, %v2200_v39  ;;  %v2460_v18 = vpack.c.bf16 %v2439_v58, %v2438_v12  ;;  %v2374_v25 = vmul.f32 %v4618_v43, %v2335_v51  ;;  %v2410_v47 = vadd.f32 %v4630_v24, %v2371_v61  ;;  %v2775_v61 = vld [vmem:[%s3805_s11 + $0x30] sm:$0xff] }
 0x310   : > { %v2333_v29 = vld [vmem:[#allocation3 + $0xc8] sm:$0xff]  ;;  %v2444_v23 = vmax.f32 %v2412_v49, 0.0 }
 0x311   : > { %2305 = vst.msk [vmem:[#allocation3 + $0xe8] sm:$0xff] %vm1470_vm6, %v2273_v17  ;;  %3439 = vmatprep.mubr.msk.bf16.mxu1 %vm1470_vm6, %v2460_v18  ;;  %v2372_v32 = vmul.f32 %v4618_v43, %v2333_v29  ;;  %v2413_v48 = vadd.f32 %v4630_v24, %v2374_v25  ;;  %v2442_v27 = vmax.f32 %v2410_v47, 0.0  ;;  %v2773_v18 = vld [vmem:[%s3805_s11 + $0x20] sm:$0xff] }
 0x312   : > { %3440 = vmatmul.mubr.msk.bf16.gmra.mxu1 %vm1470_vm6, %v2461_v26  ;;  %v2338_v52 = vld [vmem:[#allocation3 + $0xf0] sm:$0xff] }
 0x313   : > { %v2411_v50 = vadd.f32 %v4630_v24, %v2372_v32  ;;  %v2445_v53 = vmax.f32 %v2413_v48, 0.0  ;;  %v2377_v38 = vmul.f32 %v4618_v43, %v2338_v52  ;;  %v2776_v48 = vld [vmem:[%s3805_s11 + $0x38] sm:$0xff] }
 0x314   : > { %v2336_v16 = vld [vmem:[#allocation3 + $0xe0] sm:$0xff] }
 0x315   : > { %v2443_v30 = vmax.f32 %v2411_v50, 0.0  ;;  %v2375_v22 = vmul.f32 %v4618_v43, %v2336_v16  ;;  %v2463_v28 = vpack.c.bf16 %v2445_v53, %v2444_v23  ;;  %v2416_v42 = vadd.f32 %v4630_v24, %v2377_v38 }
 0x316   : > { %v2339_v37 = vld [vmem:[#allocation3 + $0xf8] sm:$0xff] }
 0x317   : > { %v2462_v44 = vpack.c.bf16 %v2443_v30, %v2442_v27  ;;  %v2378_v54 = vmul.f32 %v4618_v43, %v2339_v37  ;;  %v2414_v56 = vadd.f32 %v4630_v24, %v2375_v22  ;;  %v2448_v0 = vmax.f32 %v2416_v42, 0.0  ;;  %v2774_v27 = vld [vmem:[%s3805_s11 + $0x28] sm:$0xff] }
 0x318   : > { %v2337_v40 = vld [vmem:[#allocation3 + $0xe8] sm:$0xff] }
 0x319   : > { %3443 = vmatprep.mubr.msk.bf16.mxu1 %vm1470_vm6, %v2462_v44  ;;  %v2376_v3 = vmul.f32 %v4618_v43, %v2337_v40  ;;  %v2417_v41 = vadd.f32 %v4630_v24, %v2378_v54  ;;  %v2446_v59 = vmax.f32 %v2414_v56, 0.0  ;;  %v4758_v43 = vld [vmem:[%s4955_s8] ss:$0 sm:$0xff]  ;;  %v2779_v44 = vld [vmem:[%s3805_s11 + $0x50] sm:$0xff] }
 0x31a   : > { %3444 = vmatmul.mubr.msk.bf16.gmra.mxu1 %vm1470_vm6, %v2463_v28 }
 0x31b   : > { %v2415_v55 = vadd.f32 %v4630_v24, %v2376_v3  ;;  %v2449_v57 = vmax.f32 %v2417_v41, 0.0  ;;  %v4763_v24 = vld [vmem:[%s4956_s9] ss:$0 sm:$0xff] }
 0x31c   : > { %v2777_v41 = vld [vmem:[%s3805_s11 + $0x40] sm:$0xff] }
 0x31d   : > { %v2447_v63 = vmax.f32 %v2415_v55, 0.0  ;;  %v2465_v4 = vpack.c.bf16 %v2449_v57, %v2448_v0  ;;  %v2780_v0 = vld [vmem:[%s3805_s11 + $0x58] sm:$0xff] }
 0x31f   : > { %v2464_v1 = vpack.c.bf16 %v2447_v63, %v2446_v59 }
 0x321   : > { %3447 = vmatprep.mubr.msk.bf16.mxu1 %vm1470_vm6, %v2464_v1 }
 0x322   : > { %3448 = vmatmul.mubr.msk.bf16.gmra.mxu1 %vm1470_vm6, %v2465_v4 }
 0x3aa   : > { %v3421_v11 = vpop.f32.mrf.mxu1 }
 0x3ab   : > { %v2700_v13 = vmul.f32 %v3421_v11, %v4758_v43 }
 0x3ac   : > { %v2564_v14 = vpop.f32.mrf.mxu1 }
 0x3ad   : > { %v2739_v19 = vadd.f32 %v4763_v24, %v2700_v13  ;;  %v2698_v20 = vmul.f32 %v4758_v43, %v2564_v14  ;;  %v2778_v14 = vld [vmem:[%s3805_s11 + $0x48] sm:$0xff] }
 0x3ae   : > { %v3422_v33 = vpop.f32.mrf.mxu1 }
 0x3af   : > { %v2803_v34 = vadd.f32 %v2771_v2, %v2739_v19  ;;  %v2737_v35 = vadd.f32 %v4763_v24, %v2698_v20  ;;  %v2701_v36 = vmul.f32 %v3422_v33, %v4758_v43 }
 0x3b0   : > { %v2567_v46 = vpop.f32.mrf.mxu1 }
 0x3b1   : > { %v2835_v60 = vmax.f32 %v2803_v34, 0.0  ;;  %v2801_v62 = vadd.f32 %v2769_v21, %v2737_v35  ;;  %v2740_v5 = vadd.f32 %v4763_v24, %v2701_v36  ;;  %v2699_v6 = vmul.f32 %v4758_v43, %v2567_v46  ;;  %v2783_v35 = vld [vmem:[%s3805_s11 + $0x70] sm:$0xff] }
 0x3b2   : > { %v3425_v8 = vpop.f32.mrf.mxu1 }
 0x3b3   : > { %2867 = vst [vmem:[%s4778_s27 + $0x10] sm:$0xff] %v2835_v60  ;;  %v2833_v9 = vmax.f32 %v2801_v62, 0.0  ;;  %v2804_v10 = vadd.f32 %v2772_v45, %v2740_v5  ;;  %v2738_v12 = vadd.f32 %v4763_v24, %v2699_v6  ;;  %v2704_v58 = vmul.f32 %v3425_v8, %v4758_v43  ;;  %v2781_v5 = vld [vmem:[%s3805_s11 + $0x60] sm:$0xff] }
 0x3b4   : > { %v2580_v39 = vpop.f32.mrf.mxu1 }
 0x3b5   : > { %2865 = vst [vmem:[%s4778_s27] sm:$0xff] %v2833_v9  ;;  %v2836_v31 = vmax.f32 %v2804_v10, 0.0  ;;  %v2802_v51 = vadd.f32 %v2770_v7, %v2738_v12  ;;  %v2743_v15 = vadd.f32 %v4763_v24, %v2704_v58  ;;  %v2702_v17 = vmul.f32 %v4758_v43, %v2580_v39  ;;  %v2784_v12 = vld [vmem:[%s3805_s11 + $0x78] sm:$0xff] }
 0x3b6   : > { %v3426_v25 = vpop.f32.mrf.mxu1 }
 0x3b7   : > { %2868 = vst [vmem:[%s4778_s27 + $0x18] sm:$0xff] %v2836_v31  ;;  %v2834_v26 = vmax.f32 %v2802_v51, 0.0  ;;  %v2807_v29 = vadd.f32 %v2775_v61, %v2743_v15  ;;  %v2741_v32 = vadd.f32 %v4763_v24, %v2702_v17  ;;  %v2705_v47 = vmul.f32 %v3426_v25, %v4758_v43  ;;  %v2782_v15 = vld [vmem:[%s3805_s11 + $0x68] sm:$0xff] }
 0x3b8   : > { %v2583_v49 = vpop.f32.mrf.mxu1 }
 0x3b9   : > { %2866 = vst [vmem:[%s4778_s27 + $0x8] sm:$0xff] %v2834_v26  ;;  %v2839_v50 = vmax.f32 %v2807_v29, 0.0  ;;  %v2805_v52 = vadd.f32 %v2773_v18, %v2741_v32  ;;  %v2744_v53 = vadd.f32 %v4763_v24, %v2705_v47  ;;  %v2703_v16 = vmul.f32 %v4758_v43, %v2583_v49  ;;  %v2787_v32 = vld [vmem:[%s3805_s11 + $0x90] sm:$0xff] }
 0x3ba   : > { %v3429_v30 = vpop.f32.mrf.mxu1 }
 0x3bb   : > { %2871 = vst [vmem:[%s4778_s27 + $0x30] sm:$0xff] %v2839_v50  ;;  %v2837_v22 = vmax.f32 %v2805_v52, 0.0  ;;  %v2808_v23 = vadd.f32 %v2776_v48, %v2744_v53  ;;  %v2742_v37 = vadd.f32 %v4763_v24, %v2703_v16  ;;  %v2708_v38 = vmul.f32 %v3429_v30, %v4758_v43  ;;  %v2785_v53 = vld [vmem:[%s3805_s11 + $0x80] sm:$0xff] }
 0x3bc   : > { %v2596_v54 = vpop.f32.mrf.mxu1 }
 0x3bd   : > { %2869 = vst [vmem:[%s4778_s27 + $0x20] sm:$0xff] %v2837_v22  ;;  %v2840_v28 = vmax.f32 %v2808_v23, 0.0  ;;  %v2806_v40 = vadd.f32 %v2774_v27, %v2742_v37  ;;  %v2747_v3 = vadd.f32 %v4763_v24, %v2708_v38  ;;  %v2706_v56 = vmul.f32 %v4758_v43, %v2596_v54  ;;  %v2788_v37 = vld [vmem:[%s3805_s11 + $0x98] sm:$0xff] }
 0x3be   : > { %v3430_v42 = vpop.f32.mrf.mxu1 }
 0x3bf   : > { %2872 = vst [vmem:[%s4778_s27 + $0x38] sm:$0xff] %v2840_v28  ;;  %v2838_v55 = vmax.f32 %v2806_v40, 0.0  ;;  %v2811_v57 = vadd.f32 %v2779_v44, %v2747_v3  ;;  %v2745_v59 = vadd.f32 %v4763_v24, %v2706_v56  ;;  %v2709_v63 = vmul.f32 %v3430_v42, %v4758_v43  ;;  %v2786_v3 = vld [vmem:[%s3805_s11 + $0x88] sm:$0xff] }
 0x3c0   : > { %v2599_v1 = vpop.f32.mrf.mxu1 }
 0x3c1   : > { %2870 = vst [vmem:[%s4778_s27 + $0x28] sm:$0xff] %v2838_v55  ;;  %v2843_v4 = vmax.f32 %v2811_v57, 0.0  ;;  %v2809_v11 = vadd.f32 %v2777_v41, %v2745_v59  ;;  %v2748_v13 = vadd.f32 %v4763_v24, %v2709_v63  ;;  %v2707_v2 = vmul.f32 %v4758_v43, %v2599_v1  ;;  %v2791_v59 = vld [vmem:[%s3805_s11 + $0xb0] sm:$0xff] }
 0x3c2   : > { %v3433_v19 = vpop.f32.mrf.mxu1 }
 0x3c3   : > { %2875 = vst [vmem:[%s4778_s27 + $0x50] sm:$0xff] %v2843_v4  ;;  %v2841_v20 = vmax.f32 %v2809_v11, 0.0  ;;  %v2812_v21 = vadd.f32 %v2780_v0, %v2748_v13  ;;  %v2746_v33 = vadd.f32 %v4763_v24, %v2707_v2  ;;  %v2712_v34 = vmul.f32 %v3433_v19, %v4758_v43  ;;  %v2789_v13 = vld [vmem:[%s3805_s11 + $0xa0] sm:$0xff] }
 0x3c4   : > { %v2612_v36 = vpop.f32.mrf.mxu1 }
 0x3c5   : > { %2873 = vst [vmem:[%s4778_s27 + $0x40] sm:$0xff] %v2841_v20  ;;  %v2844_v45 = vmax.f32 %v2812_v21, 0.0  ;;  %v2810_v46 = vadd.f32 %v2778_v14, %v2746_v33  ;;  %v2751_v60 = vadd.f32 %v4763_v24, %v2712_v34  ;;  %v2710_v62 = vmul.f32 %v4758_v43, %v2612_v36  ;;  %v2792_v33 = vld [vmem:[%s3805_s11 + $0xb8] sm:$0xff] }
 0x3c6   : > { %v3434_v6 = vpop.f32.mrf.mxu1 }
 0x3c7   : > { %2876 = vst [vmem:[%s4778_s27 + $0x58] sm:$0xff] %v2844_v45  ;;  %v2842_v7 = vmax.f32 %v2810_v46, 0.0  ;;  %v2815_v8 = vadd.f32 %v2783_v35, %v2751_v60  ;;  %v2749_v9 = vadd.f32 %v4763_v24, %v2710_v62  ;;  %v2713_v10 = vmul.f32 %v3434_v6, %v4758_v43  ;;  %v2790_v60 = vld [vmem:[%s3805_s11 + $0xa8] sm:$0xff] }
 0x3c8   : > { %v2615_v58 = vpop.f32.mrf.mxu1 }
 0x3c9   : > { %2874 = vst [vmem:[%s4778_s27 + $0x48] sm:$0xff] %v2842_v7  ;;  %v2847_v61 = vmax.f32 %v2815_v8, 0.0  ;;  %v2813_v39 = vadd.f32 %v2781_v5, %v2749_v9  ;;  %v2752_v31 = vadd.f32 %v4763_v24, %v2713_v10  ;;  %v2711_v51 = vmul.f32 %v4758_v43, %v2615_v58  ;;  %v2795_v9 = vld [vmem:[%s3805_s11 + $0xd0] sm:$0xff] }
 0x3ca   : > { %v3437_v17 = vpop.f32.mrf.mxu1 }
 0x3cb   : > { %2879 = vst [vmem:[%s4778_s27 + $0x70] sm:$0xff] %v2847_v61  ;;  %v2845_v18 = vmax.f32 %v2813_v39, 0.0  ;;  %v2816_v25 = vadd.f32 %v2784_v12, %v2752_v31  ;;  %v2750_v26 = vadd.f32 %v4763_v24, %v2711_v51  ;;  %v2716_v29 = vmul.f32 %v3437_v17, %v4758_v43  ;;  %v2793_v31 = vld [vmem:[%s3805_s11 + $0xc0] sm:$0xff] }
 0x3cc   : > { %v2628_v47 = vpop.f32.mrf.mxu1 }
 0x3cd   : > { %2877 = vst [vmem:[%s4778_s27 + $0x60] sm:$0xff] %v2845_v18  ;;  %v2848_v48 = vmax.f32 %v2816_v25, 0.0  ;;  %v2814_v49 = vadd.f32 %v2782_v15, %v2750_v26  ;;  %v2755_v50 = vadd.f32 %v4763_v24, %v2716_v29  ;;  %v2714_v52 = vmul.f32 %v4758_v43, %v2628_v47  ;;  %v2796_v26 = vld [vmem:[%s3805_s11 + $0xd8] sm:$0xff] }
 0x3ce   : > { %v3438_v16 = vpop.f32.mrf.mxu1 }
 0x3cf   : > { %2880 = vst [vmem:[%s4778_s27 + $0x78] sm:$0xff] %v2848_v48  ;;  %v2846_v27 = vmax.f32 %v2814_v49, 0.0  ;;  %v2819_v30 = vadd.f32 %v2787_v32, %v2755_v50  ;;  %v2753_v22 = vadd.f32 %v4763_v24, %v2714_v52  ;;  %v2717_v23 = vmul.f32 %v3438_v16, %v4758_v43  ;;  %v2794_v50 = vld [vmem:[%s3805_s11 + $0xc8] sm:$0xff] }
 0x3d0   : > { %v2631_v38 = vpop.f32.mrf.mxu1 }
 0x3d1   : > { %2878 = vst [vmem:[%s4778_s27 + $0x68] sm:$0xff] %v2846_v27  ;;  %v2851_v44 = vmax.f32 %v2819_v30, 0.0  ;;  %v2817_v54 = vadd.f32 %v2785_v53, %v2753_v22  ;;  %v2756_v28 = vadd.f32 %v4763_v24, %v2717_v23  ;;  %v2715_v40 = vmul.f32 %v4758_v43, %v2631_v38  ;;  %v2799_v22 = vld [vmem:[%s3805_s11 + $0xf0] sm:$0xff] }
 0x3d2   : > { %v3441_v56 = vpop.f32.mrf.mxu1 }
 0x3d3   : > { %2883 = vst [vmem:[%s4778_s27 + $0x90] sm:$0xff] %v2851_v44  ;;  %v2849_v41 = vmax.f32 %v2817_v54, 0.0  ;;  %v2820_v42 = vadd.f32 %v2788_v37, %v2756_v28  ;;  %v2754_v55 = vadd.f32 %v4763_v24, %v2715_v40  ;;  %v2720_v57 = vmul.f32 %v3441_v56, %v4758_v43  ;;  %v2797_v28 = vld [vmem:[%s3805_s11 + $0xe0] sm:$0xff] }
 0x3d4   : > { %v2644_v63 = vpop.f32.mrf.mxu1 }
 0x3d5   : > { %2881 = vst [vmem:[%s4778_s27 + $0x80] sm:$0xff] %v2849_v41  ;;  %v2852_v0 = vmax.f32 %v2820_v42, 0.0  ;;  %v2818_v1 = vadd.f32 %v2786_v3, %v2754_v55  ;;  %v2759_v4 = vadd.f32 %v4763_v24, %v2720_v57  ;;  %v2718_v11 = vmul.f32 %v4758_v43, %v2644_v63  ;;  %v2800_v55 = vld [vmem:[%s3805_s11 + $0xf8] sm:$0xff] }
 0x3d6   : > { %v3442_v2 = vpop.f32.mrf.mxu1 }
 0x3d7   : > { %2884 = vst [vmem:[%s4778_s27 + $0x98] sm:$0xff] %v2852_v0  ;;  %v2850_v14 = vmax.f32 %v2818_v1, 0.0  ;;  %v2823_v19 = vadd.f32 %v2791_v59, %v2759_v4  ;;  %v2757_v20 = vadd.f32 %v4763_v24, %v2718_v11  ;;  %v2721_v21 = vmul.f32 %v3442_v2, %v4758_v43  ;;  %v2798_v4 = vld [vmem:[%s3805_s11 + $0xe8] sm:$0xff]  ;;  %s2898_s11 = scalar_lea.sflag [#allocation6], %s3799_s19 }
 0x3d8   : > { %v2647_v34 = vpop.f32.mrf.mxu1 }
 0x3d9   : > { %2882 = vst [vmem:[%s4778_s27 + $0x88] sm:$0xff] %v2850_v14  ;;  %v2855_v35 = vmax.f32 %v2823_v19, 0.0  ;;  %v2821_v36 = vadd.f32 %v2789_v13, %v2757_v20  ;;  %v2760_v45 = vadd.f32 %v4763_v24, %v2721_v21  ;;  %v2719_v46 = vmul.f32 %v4758_v43, %v2647_v34 }
 0x3da   : > { %v3445_v62 = vpop.f32.mrf.mxu1 }
 0x3db   : > { %2887 = vst [vmem:[%s4778_s27 + $0xb0] sm:$0xff] %v2855_v35  ;;  %v2853_v5 = vmax.f32 %v2821_v36, 0.0  ;;  %v2824_v6 = vadd.f32 %v2792_v33, %v2760_v45  ;;  %v2758_v7 = vadd.f32 %v4763_v24, %v2719_v46  ;;  %v2724_v8 = vmul.f32 %v3445_v62, %v4758_v43 }
 0x3dc   : > { %v2660_v10 = vpop.f32.mrf.mxu1 }
 0x3dd   : > { %2885 = vst [vmem:[%s4778_s27 + $0xa0] sm:$0xff] %v2853_v5  ;;  %v2856_v12 = vmax.f32 %v2824_v6, 0.0  ;;  %v2822_v58 = vadd.f32 %v2790_v60, %v2758_v7  ;;  %v2763_v61 = vadd.f32 %v4763_v24, %v2724_v8  ;;  %v2722_v39 = vmul.f32 %v4758_v43, %v2660_v10 }
 0x3de   : > { %v3446_v51 = vpop.f32.mrf.mxu1 }
 0x3df   : > { %2888 = vst [vmem:[%s4778_s27 + $0xb8] sm:$0xff] %v2856_v12  ;;  %v2854_v15 = vmax.f32 %v2822_v58, 0.0  ;;  %v2827_v17 = vadd.f32 %v2795_v9, %v2763_v61  ;;  %v2761_v18 = vadd.f32 %v4763_v24, %v2722_v39  ;;  %v2725_v25 = vmul.f32 %v3446_v51, %v4758_v43 }
 0x3e0   : > { %v2663_v29 = vpop.f32.mrf.mxu1 }
 0x3e1   : > { %2886 = vst [vmem:[%s4778_s27 + $0xa8] sm:$0xff] %v2854_v15  ;;  %v2859_v32 = vmax.f32 %v2827_v17, 0.0  ;;  %v2825_v47 = vadd.f32 %v2793_v31, %v2761_v18  ;;  %v2764_v48 = vadd.f32 %v4763_v24, %v2725_v25  ;;  %v2723_v49 = vmul.f32 %v4758_v43, %v2663_v29 }
 0x3e2   : > { %v3449_v52 = vpop.f32.mrf.mxu1 }
 0x3e3   : > { %2891 = vst [vmem:[%s4778_s27 + $0xd0] sm:$0xff] %v2859_v32  ;;  %v2857_v53 = vmax.f32 %v2825_v47, 0.0  ;;  %v2828_v16 = vadd.f32 %v2796_v26, %v2764_v48  ;;  %v2762_v27 = vadd.f32 %v4763_v24, %v2723_v49  ;;  %v2728_v30 = vmul.f32 %v3449_v52, %v4758_v43 }
 0x3e4   : > { %v2676_v23 = vpop.f32.mrf.mxu1 }
 0x3e5   : > { %2889 = vst [vmem:[%s4778_s27 + $0xc0] sm:$0xff] %v2857_v53  ;;  %v2860_v37 = vmax.f32 %v2828_v16, 0.0  ;;  %v2826_v38 = vadd.f32 %v2794_v50, %v2762_v27  ;;  %v2767_v44 = vadd.f32 %v4763_v24, %v2728_v30  ;;  %v2726_v54 = vmul.f32 %v4758_v43, %v2676_v23 }
 0x3e6   : > { %v3450_v40 = vpop.f32.mrf.mxu1 }
 0x3e7   : > { %2892 = vst [vmem:[%s4778_s27 + $0xd8] sm:$0xff] %v2860_v37  ;;  %v2858_v3 = vmax.f32 %v2826_v38, 0.0  ;;  %v2831_v56 = vadd.f32 %v2799_v22, %v2767_v44  ;;  %v2765_v41 = vadd.f32 %v4763_v24, %v2726_v54  ;;  %v2729_v42 = vmul.f32 %v3450_v40, %v4758_v43 }
 0x3e8   : > { %v2679_v57 = vpop.f32.mrf.mxu1 }
 0x3e9   : > { %2890 = vst [vmem:[%s4778_s27 + $0xc8] sm:$0xff] %v2858_v3  ;;  %v2863_v59 = vmax.f32 %v2831_v56, 0.0  ;;  %v2829_v63 = vadd.f32 %v2797_v28, %v2765_v41  ;;  %v2768_v0 = vadd.f32 %v4763_v24, %v2729_v42  ;;  %v2727_v1 = vmul.f32 %v4758_v43, %v2679_v57 }
 0x3eb   : > { %2895 = vst [vmem:[%s4778_s27 + $0xf0] sm:$0xff] %v2863_v59  ;;  %v2861_v11 = vmax.f32 %v2829_v63, 0.0  ;;  %v2832_v13 = vadd.f32 %v2800_v55, %v2768_v0  ;;  %v2766_v2 = vadd.f32 %v4763_v24, %v2727_v1 }
 0x3ed   : > { %2893 = vst [vmem:[%s4778_s27 + $0xe0] sm:$0xff] %v2861_v11  ;;  %v2864_v14 = vmax.f32 %v2832_v13, 0.0  ;;  %v2830_v19 = vadd.f32 %v2798_v4, %v2766_v2 }
 0x3ef   : > { %2896 = vst [vmem:[%s4778_s27 + $0xf8] sm:$0xff] %v2864_v14  ;;  %v2862_v43 = vmax.f32 %v2830_v19, 0.0 }
 0x3f1   : > { %2894 = vst [vmem:[%s4778_s27 + $0xe8] sm:$0xff] %v2862_v43 }
 0x3f2   : > { %3585 = shalt.err (!%p3582_p10)
}
 0x3f3   : > { %s3586_s12 = scalar_lea.hbm %s4900_s15, 4096  ;;  %s3590_s27 = scalar_lea.hbm %s4957_s10, 8192 }
 0x3f4   : > { %p3587_p0 = scmp.ne.s32.totalorder %s4900_s15, %s3586_s12  ;;  %p3591_p1 = scmp.lt.s32.totalorder %s4900_s15, %s4957_s10 }
 0x3f5   : > { %p3592_p3 = scmp.lt.s32.totalorder %s3590_s27, %s3586_s12 }
 0x3f6   : > { %p3588_p2 = pnand %p3587_p0, %p4972_p12 }
 0x3f7   : > { %p3593_p6 = por %p3592_p3, %p3591_p1 }
 0x3f8   : > { %p3589_p9 = pneg %p3588_p2 }
 0x3fa   : > { %p3594_p11 = pnand %p3593_p6, %p3589_p9 }
 0x3fc   : > { %3597 = shalt.err (!%p3594_p11)
}
 0x3fd   : > { %s3645_s28 = smov 128   ;;  %s3646_s30 = smov 8  }
 0x3fe   : > { %3465 = dma.vmem_to_hbm [thread:$0]  (%p4972_p12), %s4902_s18, 4096, %s4900_s15, %s2898_s11, %s3645_s28, %s3645_s28, %s3646_s30  }
 0x3ff PF: > { %s2927_s17 = sand.u32 1, %s3624_s13   ;;  %p4973_p13 = scmp.ne.s32.totalorder %s4969_s26, 0 }
 0x400   : > { %p4974_p4 = scmp.ge.s32.totalorder %s3636_s16, 2  ;;  %s2928_s23 = scalar_lea.sflag [#allocation6], %s2927_s17 }
 0x402   : > { %p3472_p5 = pnand %p4974_p4, %p4973_p13 }
 0x404   : > { %p3473_p7 = pneg %p3472_p5 }
 0x406   : > { %3619 = dma.done.wait (%p3473_p7), %s2928_s23, 4096  }
 0x407   : > { %3621 = vsyncadd (%p3473_p7), %s2928_s23, 4294963200  ;;  %s4975_s16 = sld [smem:[#allocation11_spill]]  ;;  %s4978_s13 = smov %s3628_s14 }
 0x408   : > { %s4976_s22 = sld [smem:[#allocation10_spill]] }
 0x409   : > { %s4977_s15 = sld [smem:[#allocation12_spill]] }
 0x40d   : > { %p23_p8 = scmp.ge.s32.totalorder %s4975_s16, 4  }
 0x40e   : > { %s4979_s14 = smov %s4976_s22 }
 0x40f   :  { %25 = sbr.rel (!%p23_p8) target bundleno = 5 (0x5), region = 110 }
 0x414   :  { %2933 = vsyncpa [#allocation5], 1 }
 0x415   :  { %2935 = vsyncpa [#allocation5 + $0x1], 1 }
 0x416   :  { %2936 = vsyncpa [#allocation6], 1 }
 0x417   :  { %2938 = vsyncpa [#allocation6 + $0x1], 1 }

</bundles_post_ra>
